<compile_context>
chip_gen: v7x
topology: tpu7x:2x2x1
jax: 0.10.0
libtpu: 0.0.40
codegen_flags: <defaults>
</compile_context>

<pallas_src>
import functools
import math

import jax
import jax.numpy as jnp
from jax import lax
from jax.experimental import pallas as pl
from jax.experimental.pallas import tpu as pltpu


# ---------------------------------------------------------------------------
# Pallas kernel: one full TransformerEncoderBlock
# ---------------------------------------------------------------------------
def _encoder_layer_kernel(xq_ref, xk_ref,
                          ln1_g_ref, ln1_b_ref,
                          wq_ref, bq_ref, wkv_ref, bkv_ref,
                          ow_ref, ob_ref,
                          ln2_g_ref, ln2_b_ref,
                          w1_ref, b1_ref, w2_ref, b2_ref,
                          o_ref,
                          *, n_heads, causal, q_tile):
    f32 = jnp.float32
    bf16 = jnp.bfloat16

    xq = xq_ref[...].astype(f32)          # (tq, d)
    xk = xk_ref[...].astype(f32)          # (Lk, d)
    tq, d = xq.shape
    Lk = xk.shape[0]
    hd = d // n_heads

    def layer_norm(x, g, b):
        mu = jnp.mean(x, axis=-1, keepdims=True)
        var = jnp.mean(jnp.square(x - mu), axis=-1, keepdims=True)
        return (x - mu) * lax.rsqrt(var + 1e-5) * g + b

    # --- TransformerBlock: shared pre-LN on query / key / value -------------
    g1, be1 = ln1_g_ref[...], ln1_b_ref[...]
    nq = layer_norm(xq, g1, be1)                       # (tq, d) f32
    nk = layer_norm(xk, g1, be1)                       # (Lk, d) f32

    # Fused QKV projections.  Weights are pre-transposed to (d_in, d_out) and
    # bf16; Wq / bq were pre-scaled by 1/sqrt(hd) on the host.
    q = jnp.dot(nq.astype(bf16), wq_ref[...],
                preferred_element_type=f32) + bq_ref[...]        # (tq, d)
    kv = jnp.dot(nk.astype(bf16), wkv_ref[...],
                 preferred_element_type=f32) + bkv_ref[...]      # (Lk, 2d)
    q_b = q.astype(bf16)
    k_b = kv[:, :d].astype(bf16)
    v_b = kv[:, d:].astype(bf16)

    # Causal ("future") mask, computed once per tile (hoisted out of the head
    # loop).  Large finite negative instead of -inf (NaN-safe).
    if causal:
        q_off = pl.program_id(1) * q_tile
        row = q_off + lax.broadcasted_iota(jnp.int32, (tq, Lk), 0)
        col = lax.broadcasted_iota(jnp.int32, (tq, Lk), 1)
        neg_bias = jnp.where(col > row, -1e30, 0.0).astype(f32)

    nt_dims = (((1,), (1,)), ((), ()))    # contract last dims: q @ k^T, no transpose op

    attn = jnp.zeros((tq, d), f32)
    for h in range(n_heads):              # static unrolled loop over heads
        sl = slice(h * hd, (h + 1) * hd)
        s = lax.dot_general(q_b[:, sl], k_b[:, sl], nt_dims,
                            preferred_element_type=f32)          # (tq, Lk)
        if causal:
            s = s + neg_bias
        m = jnp.max(s, axis=-1, keepdims=True)
        p = jnp.exp(s - m)
        denom = jnp.sum(p, axis=-1, keepdims=True)
        p = p * pl.reciprocal(denom, approx=True)
        ctx = jnp.dot(p.astype(bf16), v_b[:, sl],
                      preferred_element_type=f32)                # (tq, hd)
        # Accumulate the per-head slice of out_proj -> no lane-axis concat.
        attn = attn + jnp.dot(ctx.astype(bf16), ow_ref[h],
                              preferred_element_type=f32)        # (tq, d)
    attn = attn + ob_ref[...]
    x = nq + attn        # residual from the *normed* query (matches PyTorch code)

    # --- FeedForwardBlock ----------------------------------------------------
    n2 = layer_norm(x, ln2_g_ref[...], ln2_b_ref[...])
    h1 = jnp.maximum(
        jnp.dot(n2.astype(bf16), w1_ref[...], preferred_element_type=f32)
        + b1_ref[...], 0.0)
    proj = jnp.dot(h1.astype(bf16), w2_ref[...],
                   preferred_element_type=f32) + b2_ref[...]
    o_ref[...] = (n2 + proj).astype(o_ref.dtype)   # residual from the *normed* input


_WEIGHT_KEYS = ("ln1_g", "ln1_b", "wq_t", "bq", "wkv_t", "bkv", "ow_h", "ob",
                "ln2_g", "ln2_b", "w1_t", "b1", "w2_t", "b2")


def _choose_q_tile(Lq):
    for t in (512, 256, 128, 64, 32, 16, 8):
        if t <= Lq and Lq % t == 0:
            return t
    return Lq            # small / odd Lq: single full-length tile


def encoder_layer(xq, xk, prep, n_heads, causal):
    """One TransformerEncoderBlock. xq: (B, Lq, d); xk: (B, Lk, d)."""
    B, Lq, d = xq.shape
    Lk = xk.shape[1]
    tq = _choose_q_tile(Lq)
    n_qt = Lq // tq

    kernel = functools.partial(_encoder_layer_kernel,
                               n_heads=n_heads, causal=causal, q_tile=tq)

    weights = [prep[k] for k in _WEIGHT_KEYS]

    def fixed(arr):
        nd = arr.ndim
        return pl.BlockSpec(arr.shape, lambda b, qt: (0,) * nd)

    in_specs = ([pl.BlockSpec((None, tq, d), lambda b, qt: (b, qt, 0)),   # query tile
                 pl.BlockSpec((None, Lk, d), lambda b, qt: (b, 0, 0))]    # full key/value
                + [fixed(w) for w in weights])                            # resident weights
    out_spec = pl.BlockSpec((None, tq, d), lambda b, qt: (b, qt, 0))

    flops = 2 * B * (Lq * d * d + Lk * d * 2 * d + 2 * Lq * Lk * d
                     + Lq * d * d + 8 * Lq * d * d)
    transcendentals = B * (n_heads * Lq * (Lk + 1) + 4 * (Lq + Lk))
    bytes_accessed = (4 * (xq.size + xk.size + B * Lq * d)
                      + sum(int(w.size) * w.dtype.itemsize for w in weights))
    cost = pl.CostEstimate(flops=int(flops),
                           transcendentals=int(transcendentals),
                           bytes_accessed=int(bytes_accessed))

    return pl.pallas_call(
        kernel,
        out_shape=jax.ShapeDtypeStruct((B, Lq, d), xq.dtype),
        grid=(B, n_qt),
        in_specs=in_specs,
        out_specs=out_spec,
        compiler_params=pltpu.CompilerParams(
            dimension_semantics=("parallel", "parallel"),
            vmem_limit_bytes=64 * 1024 * 1024),
        cost_estimate=cost,
    )(xq, xk, *weights)


# ---------------------------------------------------------------------------
# Host-side weight preparation (done once, outside the kernels):
# transpose to (d_in, d_out), fuse [Wk;Wv], fold 1/sqrt(hd) into Wq, cast bf16.
# ---------------------------------------------------------------------------
def prepare_layer_params(p, n_heads):
    f32, bf16 = jnp.float32, jnp.bfloat16
    d = p["out_w"].shape[0]
    hd = d // n_heads
    scale = 1.0 / math.sqrt(hd)

    in_w = p["in_w"]                       # (3d, d), PyTorch (out, in) layout
    in_b = p["in_b"].reshape(1, 3 * d)
    wq, wk, wv = in_w[:d], in_w[d:2 * d], in_w[2 * d:]

    return dict(
        ln1_g=p["ln1_g"].reshape(1, d).astype(f32),
        ln1_b=p["ln1_b"].reshape(1, d).astype(f32),
        wq_t=(wq * scale).T.astype(bf16),                           # (d, d)
        bq=(in_b[:, :d] * scale).astype(f32),                       # (1, d)
        wkv_t=jnp.concatenate([wk.T, wv.T], axis=1).astype(bf16),   # (d, 2d)
        bkv=in_b[:, d:].astype(f32),                                # (1, 2d)
        ow_h=p["out_w"].T.reshape(n_heads, hd, d).astype(bf16),     # (H, hd, d)
        ob=p["out_b"].reshape(1, d).astype(f32),
        ln2_g=p["ln2_g"].reshape(1, d).astype(f32),
        ln2_b=p["ln2_b"].reshape(1, d).astype(f32),
        w1_t=p["w1"].T.astype(bf16),                                # (d, 4d)
        b1=p["b1"].reshape(1, -1).astype(f32),
        w2_t=p["w2"].T.astype(bf16),                                # (4d, d)
        b2=p["b2"].reshape(1, d).astype(f32),
    )


# ---------------------------------------------------------------------------
# Glue: sinusoidal positional embedding (fairseq-style, padding_idx=0 ->
# positions 1..L for fully non-padded sequences) and parameter init.
# ---------------------------------------------------------------------------
def sinusoidal_pos_emb(L, d):
    half = d // 2
    freq = math.log(10000.0) / (half - 1)
    inv = jnp.exp(jnp.arange(half, dtype=jnp.float32) * -freq)
    pos = jnp.arange(1, L + 1, dtype=jnp.float32)
    ang = pos[:, None] * inv[None, :]
    pe = jnp.concatenate([jnp.sin(ang), jnp.cos(ang)], axis=1)
    if d % 2 == 1:
        pe = jnp.concatenate([pe, jnp.zeros((L, 1), jnp.float32)], axis=1)
    return pe  # (L, d)


def init_layer_params(key, d):
    ks = jax.random.split(key, 6)
    s = 0.05
    return dict(
        ln1_g=jnp.ones((1, d), jnp.float32),
        ln1_b=jnp.zeros((1, d), jnp.float32),
        in_w=jax.random.normal(ks[0], (3 * d, d), jnp.float32) * s,
        in_b=jax.random.normal(ks[1], (1, 3 * d), jnp.float32) * s,
        out_w=jax.random.normal(ks[2], (d, d), jnp.float32) * s,
        out_b=jnp.zeros((1, d), jnp.float32),
        ln2_g=jnp.ones((1, d), jnp.float32),
        ln2_b=jnp.zeros((1, d), jnp.float32),
        w1=jax.random.normal(ks[3], (4 * d, d), jnp.float32) * s,
        b1=jax.random.normal(ks[4], (1, 4 * d), jnp.float32) * s,
        w2=jax.random.normal(ks[5], (d, 4 * d), jnp.float32) * s,
        b2=jnp.zeros((1, d), jnp.float32),
    )


def crossmodal_transformer(x_query, x_key, layer_params, *,
                           n_heads, attn_mask, scale_embedding=True):
    """Forward pass of CrossmodalTransformer.

    x_query: (B, Lq, d); x_key: (B, Lk, d) or None.
    Returns (Lq, B, d), matching the PyTorch module's output layout.
    """
    # TODO(synk): key_padding_mask (key_mask) is not implemented; only key_mask=None path.
    # TODO(synk): positional embedding assumes no padded positions (positions 1..L).
    B, Lq, d = x_query.shape
    emb_scale = math.sqrt(d) if scale_embedding else 1.0
    xq = emb_scale * x_query + sinusoidal_pos_emb(Lq, d)[None]    # emb_dropout -> identity
    if x_key is not None:
        Lk = x_key.shape[1]
        xk_fixed = emb_scale * x_key + sinusoidal_pos_emb(Lk, d)[None]
    else:
        xk_fixed = None

    prepped = [prepare_layer_params(p, n_heads) for p in layer_params]

    x = xq
    for prep in prepped:
        key_inp = xk_fixed if xk_fixed is not None else x
        x = encoder_layer(x, key_inp, prep, n_heads, bool(attn_mask))
    return jnp.transpose(x, (1, 0, 2))     # (Lq, B, d)


if __name__ == "__main__":
    B, Lq, Lk = 2, 8, 16
    d_model, n_heads, n_layers = 32, 4, 2

    key = jax.random.PRNGKey(0)
    kq, kk, kp = jax.random.split(key, 3)
    x_query = jax.random.normal(kq, (B, Lq, d_model), jnp.float32)
    x_key = jax.random.normal(kk, (B, Lk, d_model), jnp.float32)
    params = [init_layer_params(k, d_model) for k in jax.random.split(kp, n_layers)]

    out = crossmodal_transformer(x_query, x_key, params,
                                 n_heads=n_heads, attn_mask=True)
    out = jax.block_until_ready(out)
    assert out.shape == (Lq, B, d_model)
    assert bool(jnp.all(jnp.isfinite(out)))
    print("KERNEL_OK")
</pallas_src>

<mosaic_0001>
module attributes {stable_mosaic.version = 11 : i64} {
  func.func @_encoder_layer_kernel(%arg0: i32, %arg1: i32, %arg2: memref<1x8x32xf32, #tpu.memory_space<vmem>>, %arg3: memref<1x16x32xf32, #tpu.memory_space<vmem>>, %arg4: memref<1x32xf32, #tpu.memory_space<vmem>>, %arg5: memref<1x32xf32, #tpu.memory_space<vmem>>, %arg6: memref<32x32xbf16, #tpu.memory_space<vmem>>, %arg7: memref<1x32xf32, #tpu.memory_space<vmem>>, %arg8: memref<32x64xbf16, #tpu.memory_space<vmem>>, %arg9: memref<1x64xf32, #tpu.memory_space<vmem>>, %arg10: memref<4x8x32xbf16, #tpu.memory_space<vmem>>, %arg11: memref<1x32xf32, #tpu.memory_space<vmem>>, %arg12: memref<1x32xf32, #tpu.memory_space<vmem>>, %arg13: memref<1x32xf32, #tpu.memory_space<vmem>>, %arg14: memref<32x128xbf16, #tpu.memory_space<vmem>>, %arg15: memref<1x128xf32, #tpu.memory_space<vmem>>, %arg16: memref<128x32xbf16, #tpu.memory_space<vmem>>, %arg17: memref<1x32xf32, #tpu.memory_space<vmem>>, %arg18: memref<1x8x32xf32, #tpu.memory_space<vmem>>) attributes {dimension_semantics = [#tpu.dimension_semantics<parallel>, #tpu.dimension_semantics<parallel>], iteration_bounds = array<i64: 2, 1>, scalar_prefetch = 0 : i64, scratch_operands = 0 : i64, tpu.core_type = #tpu.core_type<tc>, window_params = [{transform_indices = @transform_0, window_bounds = array<i64: 1, 8, 32>}, {transform_indices = @transform_1, window_bounds = array<i64: 1, 16, 32>}, {pipeline_mode = #tpu.pipeline_mode<synchronous>, transform_indices = @transform_2, window_bounds = array<i64: 1, 32>}, {pipeline_mode = #tpu.pipeline_mode<synchronous>, transform_indices = @transform_3, window_bounds = array<i64: 1, 32>}, {pipeline_mode = #tpu.pipeline_mode<synchronous>, transform_indices = @transform_4, window_bounds = array<i64: 32, 32>}, {pipeline_mode = #tpu.pipeline_mode<synchronous>, transform_indices = @transform_5, window_bounds = array<i64: 1, 32>}, {pipeline_mode = #tpu.pipeline_mode<synchronous>, transform_indices = @transform_6, window_bounds = array<i64: 32, 64>}, {pipeline_mode = #tpu.pipeline_mode<synchronous>, transform_indices = @transform_7, window_bounds = array<i64: 1, 64>}, {pipeline_mode = #tpu.pipeline_mode<synchronous>, transform_indices = @transform_8, window_bounds = array<i64: 4, 8, 32>}, {pipeline_mode = #tpu.pipeline_mode<synchronous>, transform_indices = @transform_9, window_bounds = array<i64: 1, 32>}, {pipeline_mode = #tpu.pipeline_mode<synchronous>, transform_indices = @transform_10, window_bounds = array<i64: 1, 32>}, {pipeline_mode = #tpu.pipeline_mode<synchronous>, transform_indices = @transform_11, window_bounds = array<i64: 1, 32>}, {pipeline_mode = #tpu.pipeline_mode<synchronous>, transform_indices = @transform_12, window_bounds = array<i64: 32, 128>}, {pipeline_mode = #tpu.pipeline_mode<synchronous>, transform_indices = @transform_13, window_bounds = array<i64: 1, 128>}, {pipeline_mode = #tpu.pipeline_mode<synchronous>, transform_indices = @transform_14, window_bounds = array<i64: 128, 32>}, {pipeline_mode = #tpu.pipeline_mode<synchronous>, transform_indices = @transform_15, window_bounds = array<i64: 1, 32>}, {transform_indices = @transform_16, window_bounds = array<i64: 1, 8, 32>}]} {
    %c0 = arith.constant 0 : index
    %c0_0 = arith.constant 0 : index
    %c0_1 = arith.constant 0 : index
    %0 = vector.load %arg2[%c0, %c0_0, %c0_1] : memref<1x8x32xf32, #tpu.memory_space<vmem>>, vector<1x8x32xf32>
    %1 = vector.shape_cast %0 : vector<1x8x32xf32> to vector<8x32xf32>
    %c0_2 = arith.constant 0 : index
    %c0_3 = arith.constant 0 : index
    %c0_4 = arith.constant 0 : index
    %2 = vector.load %arg3[%c0_2, %c0_3, %c0_4] : memref<1x16x32xf32, #tpu.memory_space<vmem>>, vector<1x16x32xf32>
    %3 = vector.shape_cast %2 : vector<1x16x32xf32> to vector<16x32xf32>
    %c0_5 = arith.constant 0 : index
    %c0_6 = arith.constant 0 : index
    %4 = vector.load %arg4[%c0_5, %c0_6] : memref<1x32xf32, #tpu.memory_space<vmem>>, vector<1x32xf32>
    %c0_7 = arith.constant 0 : index
    %c0_8 = arith.constant 0 : index
    %5 = vector.load %arg5[%c0_7, %c0_8] : memref<1x32xf32, #tpu.memory_space<vmem>>, vector<1x32xf32>
    %cst = arith.constant dense<0.000000e+00> : vector<8xf32>
    %6 = vector.multi_reduction <add>, %1, %cst [1] : vector<8x32xf32> to vector<8xf32>
    %7 = vector.shape_cast %6 : vector<8xf32> to vector<8x1xf32>
    %cst_9 = arith.constant 3.200000e+01 : f32
    %8 = vector.broadcast %cst_9 : f32 to vector<8x1xf32>
    %9 = arith.divf %7, %8 : vector<8x1xf32>
    %10 = vector.broadcast %9 : vector<8x1xf32> to vector<8x32xf32>
    %11 = arith.subf %1, %10 : vector<8x32xf32>
    %12 = arith.mulf %11, %11 : vector<8x32xf32>
    %cst_10 = arith.constant dense<0.000000e+00> : vector<8xf32>
    %13 = vector.multi_reduction <add>, %12, %cst_10 [1] : vector<8x32xf32> to vector<8xf32>
    %14 = vector.shape_cast %13 : vector<8xf32> to vector<8x1xf32>
    %cst_11 = arith.constant 3.200000e+01 : f32
    %15 = vector.broadcast %cst_11 : f32 to vector<8x1xf32>
    %16 = arith.divf %14, %15 : vector<8x1xf32>
    %17 = vector.broadcast %9 : vector<8x1xf32> to vector<8x32xf32>
    %18 = arith.subf %1, %17 : vector<8x32xf32>
    %cst_12 = arith.constant 9.99999974E-6 : f32
    %19 = vector.broadcast %cst_12 : f32 to vector<8x1xf32>
    %20 = arith.addf %16, %19 : vector<8x1xf32>
    %21 = math.rsqrt %20 : vector<8x1xf32>
    %22 = vector.broadcast %21 : vector<8x1xf32> to vector<8x32xf32>
    %23 = arith.mulf %18, %22 : vector<8x32xf32>
    %24 = vector.broadcast %4 : vector<1x32xf32> to vector<8x32xf32>
    %25 = arith.mulf %23, %24 : vector<8x32xf32>
    %26 = vector.broadcast %5 : vector<1x32xf32> to vector<8x32xf32>
    %27 = arith.addf %25, %26 : vector<8x32xf32>
    %cst_13 = arith.constant dense<0.000000e+00> : vector<16xf32>
    %28 = vector.multi_reduction <add>, %3, %cst_13 [1] : vector<16x32xf32> to vector<16xf32>
    %29 = vector.shape_cast %28 : vector<16xf32> to vector<16x1xf32>
    %cst_14 = arith.constant 3.200000e+01 : f32
    %30 = vector.broadcast %cst_14 : f32 to vector<16x1xf32>
    %31 = arith.divf %29, %30 : vector<16x1xf32>
    %32 = vector.broadcast %31 : vector<16x1xf32> to vector<16x32xf32>
    %33 = arith.subf %3, %32 : vector<16x32xf32>
    %34 = arith.mulf %33, %33 : vector<16x32xf32>
    %cst_15 = arith.constant dense<0.000000e+00> : vector<16xf32>
    %35 = vector.multi_reduction <add>, %34, %cst_15 [1] : vector<16x32xf32> to vector<16xf32>
    %36 = vector.shape_cast %35 : vector<16xf32> to vector<16x1xf32>
    %cst_16 = arith.constant 3.200000e+01 : f32
    %37 = vector.broadcast %cst_16 : f32 to vector<16x1xf32>
    %38 = arith.divf %36, %37 : vector<16x1xf32>
    %39 = vector.broadcast %31 : vector<16x1xf32> to vector<16x32xf32>
    %40 = arith.subf %3, %39 : vector<16x32xf32>
    %cst_17 = arith.constant 9.99999974E-6 : f32
    %41 = vector.broadcast %cst_17 : f32 to vector<16x1xf32>
    %42 = arith.addf %38, %41 : vector<16x1xf32>
    %43 = math.rsqrt %42 : vector<16x1xf32>
    %44 = vector.broadcast %43 : vector<16x1xf32> to vector<16x32xf32>
    %45 = arith.mulf %40, %44 : vector<16x32xf32>
    %46 = vector.broadcast %4 : vector<1x32xf32> to vector<16x32xf32>
    %47 = arith.mulf %45, %46 : vector<16x32xf32>
    %48 = vector.broadcast %5 : vector<1x32xf32> to vector<16x32xf32>
    %49 = arith.addf %47, %48 : vector<16x32xf32>
    %50 = arith.truncf %27 : vector<8x32xf32> to vector<8x32xbf16>
    %c0_18 = arith.constant 0 : index
    %c0_19 = arith.constant 0 : index
    %51 = vector.load %arg6[%c0_18, %c0_19] : memref<32x32xbf16, #tpu.memory_space<vmem>>, vector<32x32xbf16>
    %cst_20 = arith.constant dense<0.000000e+00> : vector<8x32xf32>
    %52 = tpu.matmul %50, %51, %cst_20 {dimension_numbers = #tpu.dot_dimension_numbers<[1], [0], [0], [1], [0, 0, 1, 1], [], []>} : vector<8x32xbf16>, vector<32x32xbf16>, vector<8x32xf32> -> vector<8x32xf32>
    %c0_21 = arith.constant 0 : index
    %c0_22 = arith.constant 0 : index
    %53 = vector.load %arg7[%c0_21, %c0_22] : memref<1x32xf32, #tpu.memory_space<vmem>>, vector<1x32xf32>
    %54 = vector.broadcast %53 : vector<1x32xf32> to vector<8x32xf32>
    %55 = arith.addf %52, %54 : vector<8x32xf32>
    %56 = arith.truncf %49 : vector<16x32xf32> to vector<16x32xbf16>
    %c0_23 = arith.constant 0 : index
    %c0_24 = arith.constant 0 : index
    %57 = vector.load %arg8[%c0_23, %c0_24] : memref<32x64xbf16, #tpu.memory_space<vmem>>, vector<32x64xbf16>
    %cst_25 = arith.constant dense<0.000000e+00> : vector<16x64xf32>
    %58 = tpu.matmul %56, %57, %cst_25 {dimension_numbers = #tpu.dot_dimension_numbers<[1], [0], [0], [1], [0, 0, 1, 1], [], []>} : vector<16x32xbf16>, vector<32x64xbf16>, vector<16x64xf32> -> vector<16x64xf32>
    %c0_26 = arith.constant 0 : index
    %c0_27 = arith.constant 0 : index
    %59 = vector.load %arg9[%c0_26, %c0_27] : memref<1x64xf32, #tpu.memory_space<vmem>>, vector<1x64xf32>
    %60 = vector.broadcast %59 : vector<1x64xf32> to vector<16x64xf32>
    %61 = arith.addf %58, %60 : vector<16x64xf32>
    %62 = arith.truncf %55 : vector<8x32xf32> to vector<8x32xbf16>
    %63 = vector.extract_strided_slice %61 {offsets = [0, 0], sizes = [16, 32], strides = [1, 1]} : vector<16x64xf32> to vector<16x32xf32>
    %64 = arith.truncf %63 : vector<16x32xf32> to vector<16x32xbf16>
    %65 = vector.extract_strided_slice %61 {offsets = [0, 32], sizes = [16, 32], strides = [1, 1]} : vector<16x64xf32> to vector<16x32xf32>
    %66 = arith.truncf %65 : vector<16x32xf32> to vector<16x32xbf16>
    %c8_i32 = arith.constant 8 : i32
    %67 = arith.muli %arg1, %c8_i32 : i32
    %68 = tpu.iota {dimensions = array<i32: 0>} : vector<8x16xi32>
    %69 = vector.broadcast %67 : i32 to vector<8x16xi32>
    %70 = arith.addi %69, %68 : vector<8x16xi32>
    %71 = tpu.iota {dimensions = array<i32: 1>} : vector<8x16xi32>
    %72 = arith.cmpi sgt, %71, %70 : vector<8x16xi32>
    %cst_28 = arith.constant -1.000000e+30 : f32
    %cst_29 = arith.constant 0.000000e+00 : f32
    %73 = vector.broadcast %cst_28 : f32 to vector<8x16xf32>
    %74 = vector.broadcast %cst_29 : f32 to vector<8x16xf32>
    %75 = arith.select %72, %73, %74 : vector<8x16xi1>, vector<8x16xf32>
    %cst_30 = arith.constant 0.000000e+00 : f32
    %76 = vector.broadcast %cst_30 : f32 to vector<8x32xf32>
    %77 = vector.extract_strided_slice %62 {offsets = [0, 0], sizes = [8, 8], strides = [1, 1]} : vector<8x32xbf16> to vector<8x8xbf16>
    %78 = vector.extract_strided_slice %64 {offsets = [0, 0], sizes = [16, 8], strides = [1, 1]} : vector<16x32xbf16> to vector<16x8xbf16>
    %cst_31 = arith.constant dense<0.000000e+00> : vector<8x16xf32>
    %79 = tpu.matmul %77, %78, %cst_31 {dimension_numbers = #tpu.dot_dimension_numbers<[1], [1], [0], [0], [0, 0, 1, 0], [], []>} : vector<8x8xbf16>, vector<16x8xbf16>, vector<8x16xf32> -> vector<8x16xf32>
    %80 = arith.addf %79, %75 : vector<8x16xf32>
    %cst_32 = arith.constant dense<0xFF800000> : vector<8xf32>
    %81 = vector.multi_reduction <maximumf>, %80, %cst_32 [1] : vector<8x16xf32> to vector<8xf32>
    %82 = vector.shape_cast %81 : vector<8xf32> to vector<8x1xf32>
    %83 = vector.broadcast %82 : vector<8x1xf32> to vector<8x16xf32>
    %84 = arith.subf %80, %83 : vector<8x16xf32>
    %85 = math.exp %84 : vector<8x16xf32>
    %cst_33 = arith.constant dense<0.000000e+00> : vector<8xf32>
    %86 = vector.multi_reduction <add>, %85, %cst_33 [1] : vector<8x16xf32> to vector<8xf32>
    %87 = vector.shape_cast %86 : vector<8xf32> to vector<8x1xf32>
    %88 = tpu.reciprocal %87 {approx = true} : vector<8x1xf32> -> vector<8x1xf32>
    %89 = vector.broadcast %88 : vector<8x1xf32> to vector<8x16xf32>
    %90 = arith.mulf %85, %89 : vector<8x16xf32>
    %91 = arith.truncf %90 : vector<8x16xf32> to vector<8x16xbf16>
    %92 = vector.extract_strided_slice %66 {offsets = [0, 0], sizes = [16, 8], strides = [1, 1]} : vector<16x32xbf16> to vector<16x8xbf16>
    %cst_34 = arith.constant dense<0.000000e+00> : vector<8x8xf32>
    %93 = tpu.matmul %91, %92, %cst_34 {dimension_numbers = #tpu.dot_dimension_numbers<[1], [0], [0], [1], [0, 0, 1, 1], [], []>} : vector<8x16xbf16>, vector<16x8xbf16>, vector<8x8xf32> -> vector<8x8xf32>
    %94 = arith.truncf %93 : vector<8x8xf32> to vector<8x8xbf16>
    %c0_35 = arith.constant 0 : index
    %c0_36 = arith.constant 0 : index
    %c0_37 = arith.constant 0 : index
    %95 = vector.load %arg10[%c0_35, %c0_36, %c0_37] : memref<4x8x32xbf16, #tpu.memory_space<vmem>>, vector<1x8x32xbf16>
    %96 = vector.shape_cast %95 : vector<1x8x32xbf16> to vector<8x32xbf16>
    %cst_38 = arith.constant dense<0.000000e+00> : vector<8x32xf32>
    %97 = tpu.matmul %94, %96, %cst_38 {dimension_numbers = #tpu.dot_dimension_numbers<[1], [0], [0], [1], [0, 0, 1, 1], [], []>} : vector<8x8xbf16>, vector<8x32xbf16>, vector<8x32xf32> -> vector<8x32xf32>
    %98 = arith.addf %76, %97 : vector<8x32xf32>
    %99 = vector.extract_strided_slice %62 {offsets = [0, 8], sizes = [8, 8], strides = [1, 1]} : vector<8x32xbf16> to vector<8x8xbf16>
    %100 = vector.extract_strided_slice %64 {offsets = [0, 8], sizes = [16, 8], strides = [1, 1]} : vector<16x32xbf16> to vector<16x8xbf16>
    %cst_39 = arith.constant dense<0.000000e+00> : vector<8x16xf32>
    %101 = tpu.matmul %99, %100, %cst_39 {dimension_numbers = #tpu.dot_dimension_numbers<[1], [1], [0], [0], [0, 0, 1, 0], [], []>} : vector<8x8xbf16>, vector<16x8xbf16>, vector<8x16xf32> -> vector<8x16xf32>
    %102 = arith.addf %101, %75 : vector<8x16xf32>
    %cst_40 = arith.constant dense<0xFF800000> : vector<8xf32>
    %103 = vector.multi_reduction <maximumf>, %102, %cst_40 [1] : vector<8x16xf32> to vector<8xf32>
    %104 = vector.shape_cast %103 : vector<8xf32> to vector<8x1xf32>
    %105 = vector.broadcast %104 : vector<8x1xf32> to vector<8x16xf32>
    %106 = arith.subf %102, %105 : vector<8x16xf32>
    %107 = math.exp %106 : vector<8x16xf32>
    %cst_41 = arith.constant dense<0.000000e+00> : vector<8xf32>
    %108 = vector.multi_reduction <add>, %107, %cst_41 [1] : vector<8x16xf32> to vector<8xf32>
    %109 = vector.shape_cast %108 : vector<8xf32> to vector<8x1xf32>
    %110 = tpu.reciprocal %109 {approx = true} : vector<8x1xf32> -> vector<8x1xf32>
    %111 = vector.broadcast %110 : vector<8x1xf32> to vector<8x16xf32>
    %112 = arith.mulf %107, %111 : vector<8x16xf32>
    %113 = arith.truncf %112 : vector<8x16xf32> to vector<8x16xbf16>
    %114 = vector.extract_strided_slice %66 {offsets = [0, 8], sizes = [16, 8], strides = [1, 1]} : vector<16x32xbf16> to vector<16x8xbf16>
    %cst_42 = arith.constant dense<0.000000e+00> : vector<8x8xf32>
    %115 = tpu.matmul %113, %114, %cst_42 {dimension_numbers = #tpu.dot_dimension_numbers<[1], [0], [0], [1], [0, 0, 1, 1], [], []>} : vector<8x16xbf16>, vector<16x8xbf16>, vector<8x8xf32> -> vector<8x8xf32>
    %116 = arith.truncf %115 : vector<8x8xf32> to vector<8x8xbf16>
    %c1 = arith.constant 1 : index
    %c0_43 = arith.constant 0 : index
    %c0_44 = arith.constant 0 : index
    %117 = vector.load %arg10[%c1, %c0_43, %c0_44] : memref<4x8x32xbf16, #tpu.memory_space<vmem>>, vector<1x8x32xbf16>
    %118 = vector.shape_cast %117 : vector<1x8x32xbf16> to vector<8x32xbf16>
    %cst_45 = arith.constant dense<0.000000e+00> : vector<8x32xf32>
    %119 = tpu.matmul %116, %118, %cst_45 {dimension_numbers = #tpu.dot_dimension_numbers<[1], [0], [0], [1], [0, 0, 1, 1], [], []>} : vector<8x8xbf16>, vector<8x32xbf16>, vector<8x32xf32> -> vector<8x32xf32>
    %120 = arith.addf %98, %119 : vector<8x32xf32>
    %121 = vector.extract_strided_slice %62 {offsets = [0, 16], sizes = [8, 8], strides = [1, 1]} : vector<8x32xbf16> to vector<8x8xbf16>
    %122 = vector.extract_strided_slice %64 {offsets = [0, 16], sizes = [16, 8], strides = [1, 1]} : vector<16x32xbf16> to vector<16x8xbf16>
    %cst_46 = arith.constant dense<0.000000e+00> : vector<8x16xf32>
    %123 = tpu.matmul %121, %122, %cst_46 {dimension_numbers = #tpu.dot_dimension_numbers<[1], [1], [0], [0], [0, 0, 1, 0], [], []>} : vector<8x8xbf16>, vector<16x8xbf16>, vector<8x16xf32> -> vector<8x16xf32>
    %124 = arith.addf %123, %75 : vector<8x16xf32>
    %cst_47 = arith.constant dense<0xFF800000> : vector<8xf32>
    %125 = vector.multi_reduction <maximumf>, %124, %cst_47 [1] : vector<8x16xf32> to vector<8xf32>
    %126 = vector.shape_cast %125 : vector<8xf32> to vector<8x1xf32>
    %127 = vector.broadcast %126 : vector<8x1xf32> to vector<8x16xf32>
    %128 = arith.subf %124, %127 : vector<8x16xf32>
    %129 = math.exp %128 : vector<8x16xf32>
    %cst_48 = arith.constant dense<0.000000e+00> : vector<8xf32>
    %130 = vector.multi_reduction <add>, %129, %cst_48 [1] : vector<8x16xf32> to vector<8xf32>
    %131 = vector.shape_cast %130 : vector<8xf32> to vector<8x1xf32>
    %132 = tpu.reciprocal %131 {approx = true} : vector<8x1xf32> -> vector<8x1xf32>
    %133 = vector.broadcast %132 : vector<8x1xf32> to vector<8x16xf32>
    %134 = arith.mulf %129, %133 : vector<8x16xf32>
    %135 = arith.truncf %134 : vector<8x16xf32> to vector<8x16xbf16>
    %136 = vector.extract_strided_slice %66 {offsets = [0, 16], sizes = [16, 8], strides = [1, 1]} : vector<16x32xbf16> to vector<16x8xbf16>
    %cst_49 = arith.constant dense<0.000000e+00> : vector<8x8xf32>
    %137 = tpu.matmul %135, %136, %cst_49 {dimension_numbers = #tpu.dot_dimension_numbers<[1], [0], [0], [1], [0, 0, 1, 1], [], []>} : vector<8x16xbf16>, vector<16x8xbf16>, vector<8x8xf32> -> vector<8x8xf32>
    %138 = arith.truncf %137 : vector<8x8xf32> to vector<8x8xbf16>
    %c2 = arith.constant 2 : index
    %c0_50 = arith.constant 0 : index
    %c0_51 = arith.constant 0 : index
    %139 = vector.load %arg10[%c2, %c0_50, %c0_51] : memref<4x8x32xbf16, #tpu.memory_space<vmem>>, vector<1x8x32xbf16>
    %140 = vector.shape_cast %139 : vector<1x8x32xbf16> to vector<8x32xbf16>
    %cst_52 = arith.constant dense<0.000000e+00> : vector<8x32xf32>
    %141 = tpu.matmul %138, %140, %cst_52 {dimension_numbers = #tpu.dot_dimension_numbers<[1], [0], [0], [1], [0, 0, 1, 1], [], []>} : vector<8x8xbf16>, vector<8x32xbf16>, vector<8x32xf32> -> vector<8x32xf32>
    %142 = arith.addf %120, %141 : vector<8x32xf32>
    %143 = vector.extract_strided_slice %62 {offsets = [0, 24], sizes = [8, 8], strides = [1, 1]} : vector<8x32xbf16> to vector<8x8xbf16>
    %144 = vector.extract_strided_slice %64 {offsets = [0, 24], sizes = [16, 8], strides = [1, 1]} : vector<16x32xbf16> to vector<16x8xbf16>
    %cst_53 = arith.constant dense<0.000000e+00> : vector<8x16xf32>
    %145 = tpu.matmul %143, %144, %cst_53 {dimension_numbers = #tpu.dot_dimension_numbers<[1], [1], [0], [0], [0, 0, 1, 0], [], []>} : vector<8x8xbf16>, vector<16x8xbf16>, vector<8x16xf32> -> vector<8x16xf32>
    %146 = arith.addf %145, %75 : vector<8x16xf32>
    %cst_54 = arith.constant dense<0xFF800000> : vector<8xf32>
    %147 = vector.multi_reduction <maximumf>, %146, %cst_54 [1] : vector<8x16xf32> to vector<8xf32>
    %148 = vector.shape_cast %147 : vector<8xf32> to vector<8x1xf32>
    %149 = vector.broadcast %148 : vector<8x1xf32> to vector<8x16xf32>
    %150 = arith.subf %146, %149 : vector<8x16xf32>
    %151 = math.exp %150 : vector<8x16xf32>
    %cst_55 = arith.constant dense<0.000000e+00> : vector<8xf32>
    %152 = vector.multi_reduction <add>, %151, %cst_55 [1] : vector<8x16xf32> to vector<8xf32>
    %153 = vector.shape_cast %152 : vector<8xf32> to vector<8x1xf32>
    %154 = tpu.reciprocal %153 {approx = true} : vector<8x1xf32> -> vector<8x1xf32>
    %155 = vector.broadcast %154 : vector<8x1xf32> to vector<8x16xf32>
    %156 = arith.mulf %151, %155 : vector<8x16xf32>
    %157 = arith.truncf %156 : vector<8x16xf32> to vector<8x16xbf16>
    %158 = vector.extract_strided_slice %66 {offsets = [0, 24], sizes = [16, 8], strides = [1, 1]} : vector<16x32xbf16> to vector<16x8xbf16>
    %cst_56 = arith.constant dense<0.000000e+00> : vector<8x8xf32>
    %159 = tpu.matmul %157, %158, %cst_56 {dimension_numbers = #tpu.dot_dimension_numbers<[1], [0], [0], [1], [0, 0, 1, 1], [], []>} : vector<8x16xbf16>, vector<16x8xbf16>, vector<8x8xf32> -> vector<8x8xf32>
    %160 = arith.truncf %159 : vector<8x8xf32> to vector<8x8xbf16>
    %c3 = arith.constant 3 : index
    %c0_57 = arith.constant 0 : index
    %c0_58 = arith.constant 0 : index
    %161 = vector.load %arg10[%c3, %c0_57, %c0_58] : memref<4x8x32xbf16, #tpu.memory_space<vmem>>, vector<1x8x32xbf16>
    %162 = vector.shape_cast %161 : vector<1x8x32xbf16> to vector<8x32xbf16>
    %cst_59 = arith.constant dense<0.000000e+00> : vector<8x32xf32>
    %163 = tpu.matmul %160, %162, %cst_59 {dimension_numbers = #tpu.dot_dimension_numbers<[1], [0], [0], [1], [0, 0, 1, 1], [], []>} : vector<8x8xbf16>, vector<8x32xbf16>, vector<8x32xf32> -> vector<8x32xf32>
    %164 = arith.addf %142, %163 : vector<8x32xf32>
    %c0_60 = arith.constant 0 : index
    %c0_61 = arith.constant 0 : index
    %165 = vector.load %arg11[%c0_60, %c0_61] : memref<1x32xf32, #tpu.memory_space<vmem>>, vector<1x32xf32>
    %166 = vector.broadcast %165 : vector<1x32xf32> to vector<8x32xf32>
    %167 = arith.addf %164, %166 : vector<8x32xf32>
    %168 = arith.addf %27, %167 : vector<8x32xf32>
    %c0_62 = arith.constant 0 : index
    %c0_63 = arith.constant 0 : index
    %169 = vector.load %arg12[%c0_62, %c0_63] : memref<1x32xf32, #tpu.memory_space<vmem>>, vector<1x32xf32>
    %c0_64 = arith.constant 0 : index
    %c0_65 = arith.constant 0 : index
    %170 = vector.load %arg13[%c0_64, %c0_65] : memref<1x32xf32, #tpu.memory_space<vmem>>, vector<1x32xf32>
    %cst_66 = arith.constant dense<0.000000e+00> : vector<8xf32>
    %171 = vector.multi_reduction <add>, %168, %cst_66 [1] : vector<8x32xf32> to vector<8xf32>
    %172 = vector.shape_cast %171 : vector<8xf32> to vector<8x1xf32>
    %cst_67 = arith.constant 3.200000e+01 : f32
    %173 = vector.broadcast %cst_67 : f32 to vector<8x1xf32>
    %174 = arith.divf %172, %173 : vector<8x1xf32>
    %175 = vector.broadcast %174 : vector<8x1xf32> to vector<8x32xf32>
    %176 = arith.subf %168, %175 : vector<8x32xf32>
    %177 = arith.mulf %176, %176 : vector<8x32xf32>
    %cst_68 = arith.constant dense<0.000000e+00> : vector<8xf32>
    %178 = vector.multi_reduction <add>, %177, %cst_68 [1] : vector<8x32xf32> to vector<8xf32>
    %179 = vector.shape_cast %178 : vector<8xf32> to vector<8x1xf32>
    %cst_69 = arith.constant 3.200000e+01 : f32
    %180 = vector.broadcast %cst_69 : f32 to vector<8x1xf32>
    %181 = arith.divf %179, %180 : vector<8x1xf32>
    %182 = vector.broadcast %174 : vector<8x1xf32> to vector<8x32xf32>
    %183 = arith.subf %168, %182 : vector<8x32xf32>
    %cst_70 = arith.constant 9.99999974E-6 : f32
    %184 = vector.broadcast %cst_70 : f32 to vector<8x1xf32>
    %185 = arith.addf %181, %184 : vector<8x1xf32>
    %186 = math.rsqrt %185 : vector<8x1xf32>
    %187 = vector.broadcast %186 : vector<8x1xf32> to vector<8x32xf32>
    %188 = arith.mulf %183, %187 : vector<8x32xf32>
    %189 = vector.broadcast %169 : vector<1x32xf32> to vector<8x32xf32>
    %190 = arith.mulf %188, %189 : vector<8x32xf32>
    %191 = vector.broadcast %170 : vector<1x32xf32> to vector<8x32xf32>
    %192 = arith.addf %190, %191 : vector<8x32xf32>
    %193 = arith.truncf %192 : vector<8x32xf32> to vector<8x32xbf16>
    %c0_71 = arith.constant 0 : index
    %c0_72 = arith.constant 0 : index
    %194 = vector.load %arg14[%c0_71, %c0_72] : memref<32x128xbf16, #tpu.memory_space<vmem>>, vector<32x128xbf16>
    %cst_73 = arith.constant dense<0.000000e+00> : vector<8x128xf32>
    %195 = tpu.matmul %193, %194, %cst_73 {dimension_numbers = #tpu.dot_dimension_numbers<[1], [0], [0], [1], [0, 0, 1, 1], [], []>} : vector<8x32xbf16>, vector<32x128xbf16>, vector<8x128xf32> -> vector<8x128xf32>
    %c0_74 = arith.constant 0 : index
    %c0_75 = arith.constant 0 : index
    %196 = vector.load %arg15[%c0_74, %c0_75] : memref<1x128xf32, #tpu.memory_space<vmem>>, vector<1x128xf32>
    %197 = vector.broadcast %196 : vector<1x128xf32> to vector<8x128xf32>
    %198 = arith.addf %195, %197 : vector<8x128xf32>
    %cst_76 = arith.constant 0.000000e+00 : f32
    %199 = vector.broadcast %cst_76 : f32 to vector<8x128xf32>
    %200 = arith.maximumf %198, %199 : vector<8x128xf32>
    %201 = arith.truncf %200 : vector<8x128xf32> to vector<8x128xbf16>
    %c0_77 = arith.constant 0 : index
    %c0_78 = arith.constant 0 : index
    %202 = vector.load %arg16[%c0_77, %c0_78] : memref<128x32xbf16, #tpu.memory_space<vmem>>, vector<128x32xbf16>
    %cst_79 = arith.constant dense<0.000000e+00> : vector<8x32xf32>
    %203 = tpu.matmul %201, %202, %cst_79 {dimension_numbers = #tpu.dot_dimension_numbers<[1], [0], [0], [1], [0, 0, 1, 1], [], []>} : vector<8x128xbf16>, vector<128x32xbf16>, vector<8x32xf32> -> vector<8x32xf32>
    %c0_80 = arith.constant 0 : index
    %c0_81 = arith.constant 0 : index
    %204 = vector.load %arg17[%c0_80, %c0_81] : memref<1x32xf32, #tpu.memory_space<vmem>>, vector<1x32xf32>
    %205 = vector.broadcast %204 : vector<1x32xf32> to vector<8x32xf32>
    %206 = arith.addf %203, %205 : vector<8x32xf32>
    %207 = arith.addf %192, %206 : vector<8x32xf32>
    %c0_82 = arith.constant 0 : index
    %c0_83 = arith.constant 0 : index
    %c0_84 = arith.constant 0 : index
    %208 = vector.load %arg18[%c0_82, %c0_83, %c0_84] : memref<1x8x32xf32, #tpu.memory_space<vmem>>, vector<1x8x32xf32>
    %209 = vector.shape_cast %208 : vector<1x8x32xf32> to vector<8x32xf32>
    %210 = vector.shape_cast %207 : vector<8x32xf32> to vector<1x8x32xf32>
    tpu.vector_store %arg18[%c0_82, %c0_83, %c0_84], %210 {strides = array<i32>} : memref<1x8x32xf32, #tpu.memory_space<vmem>>, vector<1x8x32xf32>,
    return
  }
  func.func @transform_0(%arg0: i32, %arg1: i32) -> (i32, i32, i32) {
    %c0_i32 = arith.constant 0 : i32
    %c0_i32_0 = arith.constant 0 : i32
    return %arg0, %arg1, %c0_i32 : i32, i32, i32
  }
  func.func @transform_1(%arg0: i32, %arg1: i32) -> (i32, i32, i32) {
    %c0_i32 = arith.constant 0 : i32
    %c0_i32_0 = arith.constant 0 : i32
    %c0_i32_1 = arith.constant 0 : i32
    return %arg0, %c0_i32, %c0_i32_0 : i32, i32, i32
  }
  func.func @transform_2(%arg0: i32, %arg1: i32) -> (i32, i32) {
    %c0_i32 = arith.constant 0 : i32
    %c0_i32_0 = arith.constant 0 : i32
    %c0_i32_1 = arith.constant 0 : i32
    return %c0_i32, %c0_i32_0 : i32, i32
  }
  func.func @transform_3(%arg0: i32, %arg1: i32) -> (i32, i32) {
    %c0_i32 = arith.constant 0 : i32
    %c0_i32_0 = arith.constant 0 : i32
    %c0_i32_1 = arith.constant 0 : i32
    return %c0_i32, %c0_i32_0 : i32, i32
  }
  func.func @transform_4(%arg0: i32, %arg1: i32) -> (i32, i32) {
    %c0_i32 = arith.constant 0 : i32
    %c0_i32_0 = arith.constant 0 : i32
    %c0_i32_1 = arith.constant 0 : i32
    return %c0_i32, %c0_i32_0 : i32, i32
  }
  func.func @transform_5(%arg0: i32, %arg1: i32) -> (i32, i32) {
    %c0_i32 = arith.constant 0 : i32
    %c0_i32_0 = arith.constant 0 : i32
    %c0_i32_1 = arith.constant 0 : i32
    return %c0_i32, %c0_i32_0 : i32, i32
  }
  func.func @transform_6(%arg0: i32, %arg1: i32) -> (i32, i32) {
    %c0_i32 = arith.constant 0 : i32
    %c0_i32_0 = arith.constant 0 : i32
    %c0_i32_1 = arith.constant 0 : i32
    return %c0_i32, %c0_i32_0 : i32, i32
  }
  func.func @transform_7(%arg0: i32, %arg1: i32) -> (i32, i32) {
    %c0_i32 = arith.constant 0 : i32
    %c0_i32_0 = arith.constant 0 : i32
    %c0_i32_1 = arith.constant 0 : i32
    return %c0_i32, %c0_i32_0 : i32, i32
  }
  func.func @transform_8(%arg0: i32, %arg1: i32) -> (i32, i32, i32) {
    %c0_i32 = arith.constant 0 : i32
    %c0_i32_0 = arith.constant 0 : i32
    %c0_i32_1 = arith.constant 0 : i32
    %c0_i32_2 = arith.constant 0 : i32
    return %c0_i32, %c0_i32_0, %c0_i32_1 : i32, i32, i32
  }
  func.func @transform_9(%arg0: i32, %arg1: i32) -> (i32, i32) {
    %c0_i32 = arith.constant 0 : i32
    %c0_i32_0 = arith.constant 0 : i32
    %c0_i32_1 = arith.constant 0 : i32
    return %c0_i32, %c0_i32_0 : i32, i32
  }
  func.func @transform_10(%arg0: i32, %arg1: i32) -> (i32, i32) {
    %c0_i32 = arith.constant 0 : i32
    %c0_i32_0 = arith.constant 0 : i32
    %c0_i32_1 = arith.constant 0 : i32
    return %c0_i32, %c0_i32_0 : i32, i32
  }
  func.func @transform_11(%arg0: i32, %arg1: i32) -> (i32, i32) {
    %c0_i32 = arith.constant 0 : i32
    %c0_i32_0 = arith.constant 0 : i32
    %c0_i32_1 = arith.constant 0 : i32
    return %c0_i32, %c0_i32_0 : i32, i32
  }
  func.func @transform_12(%arg0: i32, %arg1: i32) -> (i32, i32) {
    %c0_i32 = arith.constant 0 : i32
    %c0_i32_0 = arith.constant 0 : i32
    %c0_i32_1 = arith.constant 0 : i32
    return %c0_i32, %c0_i32_0 : i32, i32
  }
  func.func @transform_13(%arg0: i32, %arg1: i32) -> (i32, i32) {
    %c0_i32 = arith.constant 0 : i32
    %c0_i32_0 = arith.constant 0 : i32
    %c0_i32_1 = arith.constant 0 : i32
    return %c0_i32, %c0_i32_0 : i32, i32
  }
  func.func @transform_14(%arg0: i32, %arg1: i32) -> (i32, i32) {
    %c0_i32 = arith.constant 0 : i32
    %c0_i32_0 = arith.constant 0 : i32
    %c0_i32_1 = arith.constant 0 : i32
    return %c0_i32, %c0_i32_0 : i32, i32
  }
  func.func @transform_15(%arg0: i32, %arg1: i32) -> (i32, i32) {
    %c0_i32 = arith.constant 0 : i32
    %c0_i32_0 = arith.constant 0 : i32
    %c0_i32_1 = arith.constant 0 : i32
    return %c0_i32, %c0_i32_0 : i32, i32
  }
  func.func @transform_16(%arg0: i32, %arg1: i32) -> (i32, i32, i32) {
    %c0_i32 = arith.constant 0 : i32
    %c0_i32_0 = arith.constant 0 : i32
    return %arg0, %arg1, %c0_i32 : i32, i32, i32
  }
}

</mosaic_0001>

<bundles_post_ra>
// kernel: tpu_custom_call.1
= control target key start
LH: loop header
LB: loop body
LE: loop exit
PB: predicated region body
PF: predicated region fallthrough
CT: control target
= control target key end

     0   :  { %s3991_s0 = inlined_call_operand.hbm [shape: f32[2,8,32], index: 0, kind: input, shape index: {}]   ;;  %s3992_s1 = inlined_call_operand.hbm [shape: f32[2,16,32], index: 1, kind: input, shape index: {}]   ;;  %s3993_s2 = inlined_call_operand.hbm [shape: f32[1,32], index: 2, kind: input, shape index: {}]   ;;  %s3994_s3 = inlined_call_operand.hbm [shape: f32[1,32], index: 3, kind: input, shape index: {}]   ;;  %s3995_s4 = inlined_call_operand.hbm [shape: bf16[32,32], index: 4, kind: input, shape index: {}]   ;;  %s3996_s5 = inlined_call_operand.hbm [shape: f32[1,32], index: 5, kind: input, shape index: {}]   ;;  %s3997_s6 = inlined_call_operand.hbm [shape: bf16[32,64], index: 6, kind: input, shape index: {}]   ;;  %s3998_s7 = inlined_call_operand.hbm [shape: f32[1,64], index: 7, kind: input, shape index: {}]   ;;  %s3999_s8 = inlined_call_operand.hbm [shape: bf16[4,8,32], index: 8, kind: input, shape index: {}]   ;;  %s4000_s9 = inlined_call_operand.hbm [shape: f32[1,32], index: 9, kind: input, shape index: {}]   ;;  %s4001_s10 = inlined_call_operand.hbm [shape: f32[1,32], index: 10, kind: input, shape index: {}]   ;;  %s4002_s11 = inlined_call_operand.hbm [shape: f32[1,32], index: 11, kind: input, shape index: {}]   ;;  %s4003_s12 = inlined_call_operand.hbm [shape: bf16[32,128], index: 12, kind: input, shape index: {}]   ;;  %s4004_s13 = inlined_call_operand.hbm [shape: f32[1,128], index: 13, kind: input, shape index: {}]   ;;  %s4005_s14 = inlined_call_operand.hbm [shape: bf16[128,32], index: 14, kind: input, shape index: {}]   ;;  %s4006_s15 = inlined_call_operand.hbm [shape: f32[1,32], index: 15, kind: input, shape index: {}]   ;;  %s4007_s16 = inlined_call_operand.hbm [shape: f32[2,8,32], index: 16, kind: output, shape index: {}]  }
   0x1   :  { %4020 = sst [smem:[#allocation45_spill]] %s3991_s0 }
   0x2   :  { %4021 = sst [smem:[#allocation46_spill]] %s3992_s1 }
   0x3   :  { %4022 = sst [smem:[#allocation47_spill]] %s3993_s2 }
   0x4   :  { %4023 = sst [smem:[#allocation48_spill]] %s3994_s3 }
   0x5   :  { %4024 = sst [smem:[#allocation49_spill]] %s3995_s4 }
   0x6   :  { %4025 = sst [smem:[#allocation50_spill]] %s3996_s5 }
   0x7   :  { %4026 = sst [smem:[#allocation51_spill]] %s3997_s6 }
   0x8   :  { %4027 = sst [smem:[#allocation52_spill]] %s3998_s7 }
   0x9   :  { %4028 = sst [smem:[#allocation53_spill]] %s3999_s8 }
   0xa   :  { %4029 = sst [smem:[#allocation54_spill]] %s4007_s16 }
   0xb   :  { %21 = vsyncpa [#allocation3], 0 }
   0xc   :  { %23 = vsyncpa [#allocation3 + $0x1], 0 }
   0xd   :  { %24 = vsyncpa [#allocation6], 0 }
   0xe   :  { %26 = vsyncpa [#allocation6 + $0x1], 0 }
   0xf   :  { %27 = vsyncpa [#allocation9], 0 }
  0x10   :  { %28 = vsyncpa [#allocation12], 0 }
  0x11   :  { %29 = vsyncpa [#allocation15], 0 }
  0x12   :  { %30 = vsyncpa [#allocation18], 0 }
  0x13   :  { %31 = vsyncpa [#allocation21], 0 }
  0x14   :  { %32 = vsyncpa [#allocation24], 0 }
  0x15   :  { %33 = vsyncpa [#allocation27], 0 }
  0x16   :  { %34 = vsyncpa [#allocation4], 0 }
  0x17   :  { %36 = vsyncpa [#allocation4 + $0x1], 0  ;;  %s3279_s21 = smov 0   ;;  %s3281_s22 = smov 0  }
  0x18   :  { %s3283_s23 = smov 0   ;;  %s3285_s24 = smov 0  }
  0x19   :  { %s3287_s25 = smov 0   ;;  %s3289_s26 = smov 0  }
  0x1a LB: > { %4030 = sst [smem:[#allocation40_spill]] %s3142_s21  ;;  %s3310_s27 = sadd.s32 4294967295, %s3162_s26   ;;  %s3162_s26 = sphi %s3289_s26, %s42_s26   ;;  %s3158_s25 = sphi %s3287_s25, %s4088_s25   ;;  %s3154_s24 = sphi %s3285_s24, %s4087_s24   ;;  %s3150_s23 = sphi %s3283_s23, %s4086_s23   ;;  %s3146_s22 = sphi %s3281_s22, %s4085_s22   ;;  %s3142_s21 = sphi %s3279_s21, %s4084_s21  }
  0x1b   : > { %4031 = sst [smem:[#allocation41_spill]] %s3146_s22  ;;  %p2093_p0 = scmp.ge.s32.totalorder %s3162_s26, 1 }
  0x1c   : > { %4032 = sst [smem:[#allocation42_spill]] %s3154_s24  ;;  %p4015_p1 = scmp.eq.s32.totalorder %s3310_s27, 0 }
  0x1d   : > { %4033 = sst [smem:[#allocation43_spill]] %s3310_s27  ;;  %p435_p2 = scmp.lt.s32.totalorder %s3162_s26, 3 }
  0x1e   : > { %s3164_s29 = smov [#allocation7]   ;;  %s3165_s0 = smov [#allocation8]  }
  0x1f   : > { %p3315_p3 = pnand %p2093_p0, %p435_p2  ;;  %s448_s30 = sshll.u32 %s3164_s29, 4  ;;  %s449_s30 = int_to_ptr.vmem [resolvable:$true] %s448_s30 }
  0x20   : > { %s459_s17 = sshll.u32 %s3165_s0, 4  ;;  %s3166_s19 = smov [#allocation11]   ;;  %s3328_s17 = int_to_ptr.vmem [resolvable:$true] %s459_s17 }
  0x21   : > { %s4034_s28 = scalar_select %p3315_p3, 1, 0 }
  0x22   : > { %p2395_p5 = pneg %p3315_p3  ;;  %s483_s20 = sshll.u32 %s3166_s19, 4  ;;  %s3330_s20 = int_to_ptr.vmem [resolvable:$true] %s483_s20 }
  0x23   : > { %4035 = sst [smem:[#allocation44_spill]] %s4034_s28  ;;  %s4037_s2 = sld [smem:[#allocation47_spill]] }
  0x24   : > { %p3324_p6 = pnand %p2395_p5, %p4015_p1 }
  0x26   : > { %p3340_p8 = pneg %p3324_p6 }
  0x29   : > { %s2592_s24 = scalar_lea.hbm %s4037_s2, 16 }
  0x2a   : > { %p2593_p7 = scmp.ne.s32.totalorder %s4037_s2, %s2592_s24  ;;  %p2599_p11 = scmp.lt.u32.totalorder %s2592_s24, %s4037_s2 }
  0x2c   : > { %p2595_p9 = pnand %p3340_p8, %p2593_p7 }
  0x2e   : > { %p2596_p10 = pneg %p2595_p9 }
  0x30   : > { %p2601_p12 = pnand %p2599_p11, %p2596_p10 }
  0x32   : > { %2604 = shalt.err (!%p2601_p12)
}
  0x33   : > { %s2605_s16 = scalar_lea.vmem %s449_s30, 16  ;;  %s2612_s1 = scalar_lea.vmem %s449_s30, 32 }
  0x34   : > { %p2606_p13 = scmp.ne.s32.totalorder %s449_s30, %s2605_s16  ;;  %p2613_p5 = scmp.lt.s32.totalorder %s449_s30, %s449_s30 }
  0x35   : > { %p2614_p4 = scmp.lt.s32.totalorder %s2612_s1, %s2605_s16 }
  0x36   : > { %p2608_p0 = pnand %p2606_p13, %p3340_p8 }
  0x37   : > { %p2615_p1 = por %p2614_p4, %p2613_p5 }
  0x38   : > { %p2609_p2 = pneg %p2608_p0 }
  0x3a   : > { %p2616_p3 = pnand %p2615_p1, %p2609_p2 }
  0x3c   : > { %2619 = shalt.err (!%p2616_p3)
}
  0x3d   : > { %2398 = dma.hbm_to_vmem [thread:$0]  (!%p3324_p6), %s4037_s2, 16, %s449_s30, [#allocation6]  }
  0x3e   : > { %s4039_s3 = sld [smem:[#allocation48_spill]] }
  0x44   : > { %s2620_s19 = scalar_lea.hbm %s4039_s3, 16 }
  0x45   : > { %p2621_p7 = scmp.ne.s32.totalorder %s4039_s3, %s2620_s19  ;;  %p2627_p1 = scmp.lt.u32.totalorder %s2620_s19, %s4039_s3 }
  0x47   : > { %p2623_p9 = pnand %p2621_p7, %p3340_p8 }
  0x49   : > { %p2624_p4 = pneg %p2623_p9 }
  0x4b   : > { %p2629_p3 = pnand %p2627_p1, %p2624_p4 }
  0x4d   : > { %2632 = shalt.err (!%p2629_p3)
}
  0x4e   : > { %s2633_s30 = scalar_lea.vmem %s3328_s17, 16  ;;  %s2640_s21 = scalar_lea.vmem %s3328_s17, 32 }
  0x4f   : > { %p2634_p10 = scmp.ne.s32.totalorder %s3328_s17, %s2633_s30  ;;  %p2641_p13 = scmp.lt.s32.totalorder %s3328_s17, %s3328_s17 }
  0x50   : > { %p2642_p0 = scmp.lt.s32.totalorder %s2640_s21, %s2633_s30 }
  0x51   : > { %p2636_p11 = pnand %p2634_p10, %p3340_p8 }
  0x52   : > { %p2643_p2 = por %p2642_p0, %p2641_p13 }
  0x53   : > { %p2637_p12 = pneg %p2636_p11 }
  0x55   : > { %p2644_p5 = pnand %p2643_p2, %p2637_p12 }
  0x57   : > { %2647 = shalt.err (!%p2644_p5)
}
  0x58   : > { %2401 = dma.hbm_to_vmem [thread:$0]  (!%p3324_p6), %s4039_s3, 16, %s3328_s17, [#allocation9]  }
  0x59   : > { %s4040_s5 = sld [smem:[#allocation50_spill]] }
  0x5f   : > { %s2648_s27 = scalar_lea.hbm %s4040_s5, 16 }
  0x60   : > { %p2649_p7 = scmp.ne.s32.totalorder %s4040_s5, %s2648_s27  ;;  %p2655_p1 = scmp.lt.u32.totalorder %s2648_s27, %s4040_s5 }
  0x62   : > { %p2651_p9 = pnand %p2649_p7, %p3340_p8 }
  0x64   : > { %p2652_p4 = pneg %p2651_p9 }
  0x66   : > { %p2657_p3 = pnand %p2655_p1, %p2652_p4 }
  0x68   : > { %2660 = shalt.err (!%p2657_p3)
}
  0x69   : > { %s2661_s17 = scalar_lea.vmem %s3330_s20, 16  ;;  %s2668_s21 = scalar_lea.vmem %s3330_s20, 32 }
  0x6a   : > { %p2662_p10 = scmp.ne.s32.totalorder %s3330_s20, %s2661_s17  ;;  %p2669_p13 = scmp.lt.s32.totalorder %s3330_s20, %s3330_s20 }
  0x6b   : > { %p2670_p0 = scmp.lt.s32.totalorder %s2668_s21, %s2661_s17 }
  0x6c   : > { %p2664_p11 = pnand %p2662_p10, %p3340_p8 }
  0x6d   : > { %p2671_p2 = por %p2670_p0, %p2669_p13 }
  0x6e   : > { %p2665_p12 = pneg %p2664_p11 }
  0x70   : > { %p2672_p5 = pnand %p2671_p2, %p2665_p12 }
  0x72   : > { %2675 = shalt.err (!%p2672_p5)
}
  0x73   : > { %2407 = dma.hbm_to_vmem [thread:$0]  (!%p3324_p6), %s4040_s5, 16, %s3330_s20, [#allocation12]  }
  0x74   : > { %s3167_s29 = smov [#allocation14]   ;;  %s3168_s27 = smov [#allocation17]  }
  0x75   : > { %s507_s24 = sshll.u32 %s3167_s29, 4  ;;  %s531_s19 = sshll.u32 %s3168_s27, 4  ;;  %s508_s24 = int_to_ptr.vmem [resolvable:$true] %s507_s24  ;;  %s532_s19 = int_to_ptr.vmem [resolvable:$true] %s531_s19 }
  0x76   : > { %s4041_s7 = sld [smem:[#allocation52_spill]] }
  0x7c   : > { %s2676_s30 = scalar_lea.hbm %s4041_s7, 16 }
  0x7d   : > { %p2677_p7 = scmp.ne.s32.totalorder %s4041_s7, %s2676_s30  ;;  %p2683_p1 = scmp.lt.u32.totalorder %s2676_s30, %s4041_s7 }
  0x7f   : > { %p2679_p9 = pnand %p2677_p7, %p3340_p8 }
  0x81   : > { %p2680_p4 = pneg %p2679_p9 }
  0x83   : > { %p2685_p3 = pnand %p2683_p1, %p2680_p4 }
  0x85   : > { %2688 = shalt.err (!%p2685_p3)
}
  0x86   : > { %s2689_s20 = scalar_lea.vmem %s508_s24, 16  ;;  %s2696_s28 = scalar_lea.vmem %s508_s24, 32 }
  0x87   : > { %p2690_p10 = scmp.ne.s32.totalorder %s508_s24, %s2689_s20  ;;  %p2697_p13 = scmp.lt.s32.totalorder %s508_s24, %s508_s24 }
  0x88   : > { %p2698_p0 = scmp.lt.s32.totalorder %s2696_s28, %s2689_s20 }
  0x89   : > { %p2692_p11 = pnand %p2690_p10, %p3340_p8 }
  0x8a   : > { %p2699_p2 = por %p2698_p0, %p2697_p13 }
  0x8b   : > { %p2693_p12 = pneg %p2692_p11 }
  0x8d   : > { %p2700_p5 = pnand %p2699_p2, %p2693_p12 }
  0x8f   : > { %2703 = shalt.err (!%p2700_p5)
}
  0x90   : > { %2413 = dma.hbm_to_vmem [thread:$0]  (!%p3324_p6), %s4041_s7, 16, %s508_s24, [#allocation15]  }
  0x91   : > { %s2704_s1 = scalar_lea.hbm %s4000_s9, 16 }
  0x92   : > { %p2705_p7 = scmp.ne.s32.totalorder %s4000_s9, %s2704_s1  ;;  %p2711_p1 = scmp.lt.u32.totalorder %s2704_s1, %s4000_s9 }
  0x94   : > { %p2707_p9 = pnand %p2705_p7, %p3340_p8 }
  0x96   : > { %p2708_p4 = pneg %p2707_p9 }
  0x98   : > { %p2713_p3 = pnand %p2711_p1, %p2708_p4 }
  0x9a   : > { %2716 = shalt.err (!%p2713_p3)
}
  0x9b   : > { %s2717_s20 = scalar_lea.vmem %s532_s19, 16  ;;  %s2724_s24 = scalar_lea.vmem %s532_s19, 32 }
  0x9c   : > { %p2718_p10 = scmp.ne.s32.totalorder %s532_s19, %s2717_s20  ;;  %p2725_p13 = scmp.lt.s32.totalorder %s532_s19, %s532_s19 }
  0x9d   : > { %p2726_p0 = scmp.lt.s32.totalorder %s2724_s24, %s2717_s20 }
  0x9e   : > { %p2720_p11 = pnand %p2718_p10, %p3340_p8 }
  0x9f   : > { %p2727_p2 = por %p2726_p0, %p2725_p13 }
  0xa0   : > { %p2721_p12 = pneg %p2720_p11 }
  0xa2   : > { %p2728_p5 = pnand %p2727_p2, %p2721_p12 }
  0xa4   : > { %2731 = shalt.err (!%p2728_p5)
}
  0xa5   : > { %2419 = dma.hbm_to_vmem [thread:$0]  (!%p3324_p6), %s4000_s9, 16, %s532_s19, [#allocation18]  }
  0xa6   : > { %s3169_s27 = smov [#allocation20]   ;;  %s3170_s16 = smov [#allocation23]  }
  0xa7   : > { %s553_s2 = sshll.u32 %s3169_s27, 4  ;;  %s577_s1 = sshll.u32 %s3170_s16, 4  ;;  %s554_s2 = int_to_ptr.vmem [resolvable:$true] %s553_s2  ;;  %s578_s1 = int_to_ptr.vmem [resolvable:$true] %s577_s1 }
  0xa8   : > { %s2732_s21 = scalar_lea.hbm %s4002_s11, 16 }
  0xa9   : > { %p2733_p7 = scmp.ne.s32.totalorder %s4002_s11, %s2732_s21  ;;  %p2739_p1 = scmp.lt.u32.totalorder %s2732_s21, %s4002_s11 }
  0xab   : > { %p2735_p9 = pnand %p2733_p7, %p3340_p8 }
  0xad   : > { %p2736_p4 = pneg %p2735_p9 }
  0xaf   : > { %p2741_p3 = pnand %p2739_p1, %p2736_p4 }
  0xb1   : > { %2744 = shalt.err (!%p2741_p3)
}
  0xb2   : > { %s2745_s19 = scalar_lea.vmem %s554_s2, 16  ;;  %s2752_s29 = scalar_lea.vmem %s554_s2, 32 }
  0xb3   : > { %p2746_p10 = scmp.ne.s32.totalorder %s554_s2, %s2745_s19  ;;  %p2753_p13 = scmp.lt.s32.totalorder %s554_s2, %s554_s2 }
  0xb4   : > { %p2754_p0 = scmp.lt.s32.totalorder %s2752_s29, %s2745_s19 }
  0xb5   : > { %p2748_p11 = pnand %p2746_p10, %p3340_p8 }
  0xb6   : > { %p2755_p2 = por %p2754_p0, %p2753_p13 }
  0xb7   : > { %p2749_p12 = pneg %p2748_p11 }
  0xb9   : > { %p2756_p5 = pnand %p2755_p2, %p2749_p12 }
  0xbb   : > { %2759 = shalt.err (!%p2756_p5)
}
  0xbc   : > { %2425 = dma.hbm_to_vmem [thread:$0]  (!%p3324_p6), %s4002_s11, 16, %s554_s2, [#allocation21]  }
  0xbd   : > { %s2760_s21 = scalar_lea.hbm %s4004_s13, 16 }
  0xbe   : > { %p2761_p7 = scmp.ne.s32.totalorder %s4004_s13, %s2760_s21  ;;  %p2767_p1 = scmp.lt.u32.totalorder %s2760_s21, %s4004_s13 }
  0xc0   : > { %p2763_p9 = pnand %p2761_p7, %p3340_p8 }
  0xc2   : > { %p2764_p4 = pneg %p2763_p9 }
  0xc4   : > { %p2769_p3 = pnand %p2767_p1, %p2764_p4 }
  0xc6   : > { %2772 = shalt.err (!%p2769_p3)
}
  0xc7   : > { %s2773_s19 = scalar_lea.vmem %s578_s1, 16  ;;  %s2780_s2 = scalar_lea.vmem %s578_s1, 32 }
  0xc8   : > { %p2774_p10 = scmp.ne.s32.totalorder %s578_s1, %s2773_s19  ;;  %p2781_p13 = scmp.lt.s32.totalorder %s578_s1, %s578_s1 }
  0xc9   : > { %p2782_p0 = scmp.lt.s32.totalorder %s2780_s2, %s2773_s19 }
  0xca   : > { %p2776_p11 = pnand %p2774_p10, %p3340_p8 }
  0xcb   : > { %p2783_p2 = por %p2782_p0, %p2781_p13 }
  0xcc   : > { %p2777_p12 = pneg %p2776_p11 }
  0xce   : > { %p2784_p5 = pnand %p2783_p2, %p2777_p12 }
  0xd0   : > { %2787 = shalt.err (!%p2784_p5)
}
  0xd1   : > { %2431 = dma.hbm_to_vmem [thread:$0]  (!%p3324_p6), %s4004_s13, 16, %s578_s1, [#allocation24]  }
  0xd2   : > { %s3171_s16 = smov [#allocation10]   ;;  %s4042_s4 = sld [smem:[#allocation49_spill]] }
  0xd3   : > { %s469_s30 = sshll.u32 %s3171_s16, 4  ;;  %s470_s30 = int_to_ptr.vmem [resolvable:$true] %s469_s30 }
  0xd8   : > { %s2788_s22 = scalar_lea.hbm %s4042_s4, 256 }
  0xd9   : > { %p2789_p7 = scmp.ne.s32.totalorder %s4042_s4, %s2788_s22  ;;  %p2795_p1 = scmp.lt.u32.totalorder %s2788_s22, %s4042_s4 }
  0xdb   : > { %p2791_p9 = pnand %p2789_p7, %p3340_p8 }
  0xdd   : > { %p2792_p4 = pneg %p2791_p9 }
  0xdf   : > { %p2797_p3 = pnand %p2795_p1, %p2792_p4 }
  0xe1   : > { %2800 = shalt.err (!%p2797_p3)
}
  0xe2   : > { %s2801_s1 = scalar_lea.vmem %s470_s30, 256  ;;  %p2809_p13 = scmp.lt.s32.totalorder %s470_s30, %s470_s30 }
  0xe3   : > { %p2802_p10 = scmp.ne.s32.totalorder %s470_s30, %s2801_s1  ;;  %p2810_p0 = scmp.lt.s32.totalorder %s2801_s1, %s2801_s1 }
  0xe5   : > { %p2804_p11 = pnand %p2802_p10, %p3340_p8  ;;  %p2811_p2 = por %p2810_p0, %p2809_p13 }
  0xe7   : > { %p2805_p12 = pneg %p2804_p11 }
  0xe9   : > { %p2812_p5 = pnand %p2811_p2, %p2805_p12 }
  0xeb   : > { %2815 = shalt.err (!%p2812_p5)
}
  0xec   : > { %s3172_s2 = smov 64   ;;  %s3173_s29 = smov 4  }
  0xed   : > { %2404 = dma.hbm_to_vmem [thread:$0]  (!%p3324_p6), %s4042_s4, 256, %s470_s30, [#allocation9], %s3172_s2, %s3172_s2, %s3173_s29  }
  0xee   : > { %s3174_s17 = smov [#allocation13]   ;;  %s3175_s22 = smov [#allocation16]  }
  0xef   : > { %s493_s21 = sshll.u32 %s3174_s17, 4  ;;  %s517_s20 = sshll.u32 %s3175_s22, 4  ;;  %s494_s21 = int_to_ptr.vmem [resolvable:$true] %s493_s21  ;;  %s3497_s20 = int_to_ptr.vmem [resolvable:$true] %s517_s20 }
  0xf0   : > { %s4043_s6 = sld [smem:[#allocation51_spill]] }
  0xf6   : > { %s2816_s19 = scalar_lea.hbm %s4043_s6, 256 }
  0xf7   : > { %p2817_p7 = scmp.ne.s32.totalorder %s4043_s6, %s2816_s19  ;;  %p2823_p1 = scmp.lt.u32.totalorder %s2816_s19, %s4043_s6 }
  0xf9   : > { %p2819_p9 = pnand %p2817_p7, %p3340_p8 }
  0xfb   : > { %p2820_p4 = pneg %p2819_p9 }
  0xfd   : > { %p2825_p3 = pnand %p2823_p1, %p2820_p4 }
  0xff   : > { %2828 = shalt.err (!%p2825_p3)
}
 0x100   : > { %s2829_s16 = scalar_lea.vmem %s494_s21, 256  ;;  %p2837_p13 = scmp.lt.s32.totalorder %s494_s21, %s494_s21 }
 0x101   : > { %p2830_p10 = scmp.ne.s32.totalorder %s494_s21, %s2829_s16  ;;  %p2838_p0 = scmp.lt.s32.totalorder %s2829_s16, %s2829_s16 }
 0x103   : > { %p2832_p11 = pnand %p2830_p10, %p3340_p8  ;;  %p2839_p2 = por %p2838_p0, %p2837_p13 }
 0x105   : > { %p2833_p12 = pneg %p2832_p11 }
 0x107   : > { %p2840_p5 = pnand %p2839_p2, %p2833_p12 }
 0x109   : > { %2843 = shalt.err (!%p2840_p5)
}
 0x10a   : > { %2410 = dma.hbm_to_vmem [thread:$0]  (!%p3324_p6), %s4043_s6, 256, %s494_s21, [#allocation12], %s3172_s2, %s3172_s2, %s3173_s29  }
 0x10b   : > { %s4044_s8 = sld [smem:[#allocation53_spill]] }
 0x111   : > { %s2844_s28 = scalar_lea.hbm %s4044_s8, 256 }
 0x112   : > { %p2845_p7 = scmp.ne.s32.totalorder %s4044_s8, %s2844_s28  ;;  %p2851_p1 = scmp.lt.u32.totalorder %s2844_s28, %s4044_s8 }
 0x114   : > { %p2847_p9 = pnand %p2845_p7, %p3340_p8 }
 0x116   : > { %p2848_p4 = pneg %p2847_p9 }
 0x118   : > { %p2853_p3 = pnand %p2851_p1, %p2848_p4 }
 0x11a   : > { %2856 = shalt.err (!%p2853_p3)
}
 0x11b   : > { %s2857_s21 = scalar_lea.vmem %s3497_s20, 256  ;;  %p2865_p13 = scmp.lt.s32.totalorder %s3497_s20, %s3497_s20 }
 0x11c   : > { %p2858_p10 = scmp.ne.s32.totalorder %s3497_s20, %s2857_s21  ;;  %p2866_p0 = scmp.lt.s32.totalorder %s2857_s21, %s2857_s21 }
 0x11e   : > { %p2860_p11 = pnand %p2858_p10, %p3340_p8  ;;  %p2867_p2 = por %p2866_p0, %p2865_p13 }
 0x120   : > { %p2861_p12 = pneg %p2860_p11 }
 0x122   : > { %p2868_p5 = pnand %p2867_p2, %p2861_p12 }
 0x124   : > { %2871 = shalt.err (!%p2868_p5)
}
 0x125   : > { %2416 = dma.hbm_to_vmem [thread:$0]  (!%p3324_p6), %s4044_s8, 256, %s3497_s20, [#allocation15], %s3172_s2, %s3172_s2, %s3173_s29  }
 0x126   : > { %s3176_s17 = smov [#allocation19]   ;;  %s3177_s24 = smov [#allocation22]  }
 0x127   : > { %s542_s22 = sshll.u32 %s3176_s17, 4  ;;  %s563_s28 = sshll.u32 %s3177_s24, 4  ;;  %s543_s22 = int_to_ptr.vmem [resolvable:$true] %s542_s22  ;;  %s3546_s28 = int_to_ptr.vmem [resolvable:$true] %s563_s28 }
 0x128   : > { %s2872_s27 = scalar_lea.hbm %s4001_s10, 16 }
 0x129   : > { %p2873_p7 = scmp.ne.s32.totalorder %s4001_s10, %s2872_s27  ;;  %p2879_p1 = scmp.lt.u32.totalorder %s2872_s27, %s4001_s10 }
 0x12b   : > { %p2875_p9 = pnand %p2873_p7, %p3340_p8 }
 0x12d   : > { %p2876_p4 = pneg %p2875_p9 }
 0x12f   : > { %p2881_p3 = pnand %p2879_p1, %p2876_p4 }
 0x131   : > { %2884 = shalt.err (!%p2881_p3)
}
 0x132   : > { %s2885_s3 = scalar_lea.vmem %s543_s22, 16  ;;  %s2892_s17 = scalar_lea.vmem %s543_s22, 32 }
 0x133   : > { %p2886_p10 = scmp.ne.s32.totalorder %s543_s22, %s2885_s3  ;;  %p2893_p13 = scmp.lt.s32.totalorder %s543_s22, %s543_s22 }
 0x134   : > { %p2894_p0 = scmp.lt.s32.totalorder %s2892_s17, %s2885_s3 }
 0x135   : > { %p2888_p11 = pnand %p2886_p10, %p3340_p8 }
 0x136   : > { %p2895_p2 = por %p2894_p0, %p2893_p13 }
 0x137   : > { %p2889_p12 = pneg %p2888_p11 }
 0x139   : > { %p2896_p5 = pnand %p2895_p2, %p2889_p12 }
 0x13b   : > { %2899 = shalt.err (!%p2896_p5)
}
 0x13c   : > { %2422 = dma.hbm_to_vmem [thread:$0]  (!%p3324_p6), %s4001_s10, 16, %s543_s22, [#allocation18]  }
 0x13d   : > { %s2900_s30 = scalar_lea.hbm %s4003_s12, 256 }
 0x13e   : > { %p2901_p7 = scmp.ne.s32.totalorder %s4003_s12, %s2900_s30  ;;  %p2907_p1 = scmp.lt.u32.totalorder %s2900_s30, %s4003_s12 }
 0x140   : > { %p2903_p9 = pnand %p2901_p7, %p3340_p8 }
 0x142   : > { %p2904_p4 = pneg %p2903_p9 }
 0x144   : > { %p2909_p3 = pnand %p2907_p1, %p2904_p4 }
 0x146   : > { %2912 = shalt.err (!%p2909_p3)
}
 0x147   : > { %s2913_s22 = scalar_lea.vmem %s3546_s28, 256  ;;  %p2921_p13 = scmp.lt.s32.totalorder %s3546_s28, %s3546_s28 }
 0x148   : > { %p2914_p10 = scmp.ne.s32.totalorder %s3546_s28, %s2913_s22  ;;  %p2922_p0 = scmp.lt.s32.totalorder %s2913_s22, %s2913_s22 }
 0x14a   : > { %p2916_p11 = pnand %p2914_p10, %p3340_p8  ;;  %p2923_p2 = por %p2922_p0, %p2921_p13 }
 0x14c   : > { %p2917_p12 = pneg %p2916_p11 }
 0x14e   : > { %p2924_p5 = pnand %p2923_p2, %p2917_p12 }
 0x150   : > { %2927 = shalt.err (!%p2924_p5)
}
 0x151   : > { %2428 = dma.hbm_to_vmem [thread:$0]  (!%p3324_p6), %s4003_s12, 256, %s3546_s28, [#allocation21], %s3172_s2, %s3172_s2, %s3173_s29  }
 0x152   : > { %s3178_s19 = smov [#allocation25]   ;;  %s3179_s27 = smov [#allocation26]  }
 0x153   : > { %s587_s1 = sshll.u32 %s3178_s19, 4  ;;  %s601_s30 = sshll.u32 %s3179_s27, 4  ;;  %s588_s1 = int_to_ptr.vmem [resolvable:$true] %s587_s1  ;;  %s3592_s30 = int_to_ptr.vmem [resolvable:$true] %s601_s30 }
 0x154   : > { %s2928_s20 = scalar_lea.hbm %s4005_s14, 1024 }
 0x155   : > { %p2929_p7 = scmp.ne.s32.totalorder %s4005_s14, %s2928_s20  ;;  %p2935_p1 = scmp.lt.u32.totalorder %s2928_s20, %s4005_s14 }
 0x157   : > { %p2931_p9 = pnand %p2929_p7, %p3340_p8 }
 0x159   : > { %p2932_p4 = pneg %p2931_p9 }
 0x15b   : > { %p2937_p3 = pnand %p2935_p1, %p2932_p4 }
 0x15d   : > { %2940 = shalt.err (!%p2937_p3)
}
 0x15e   : > { %s2941_s24 = scalar_lea.vmem %s588_s1, 1024  ;;  %p2949_p13 = scmp.lt.s32.totalorder %s588_s1, %s588_s1 }
 0x15f   : > { %p2942_p10 = scmp.ne.s32.totalorder %s588_s1, %s2941_s24  ;;  %p2950_p0 = scmp.lt.s32.totalorder %s2941_s24, %s2941_s24 }
 0x161   : > { %p2944_p11 = pnand %p2942_p10, %p3340_p8  ;;  %p2951_p2 = por %p2950_p0, %p2949_p13 }
 0x163   : > { %p2945_p12 = pneg %p2944_p11 }
 0x165   : > { %p2952_p5 = pnand %p2951_p2, %p2945_p12 }
 0x167   : > { %2955 = shalt.err (!%p2952_p5)
}
 0x168   : > { %2434 = dma.hbm_to_vmem [thread:$0]  (!%p3324_p6), %s4005_s14, 1024, %s588_s1, [#allocation24], %s3172_s2, %s3172_s2, %s3173_s29  }
 0x169   : > { %s2956_s20 = scalar_lea.hbm %s4006_s15, 16 }
 0x16a   : > { %p2957_p7 = scmp.ne.s32.totalorder %s4006_s15, %s2956_s20  ;;  %p2963_p1 = scmp.lt.u32.totalorder %s2956_s20, %s4006_s15 }
 0x16c   : > { %p2959_p9 = pnand %p2957_p7, %p3340_p8 }
 0x16e   : > { %p2960_p4 = pneg %p2959_p9 }
 0x170   : > { %p2965_p3 = pnand %p2963_p1, %p2960_p4 }
 0x172   : > { %2968 = shalt.err (!%p2965_p3)
}
 0x173   : > { %s2969_s2 = scalar_lea.vmem %s3592_s30, 16  ;;  %s2976_s29 = scalar_lea.vmem %s3592_s30, 32 }
 0x174   : > { %p2970_p10 = scmp.ne.s32.totalorder %s3592_s30, %s2969_s2  ;;  %p2977_p13 = scmp.lt.s32.totalorder %s3592_s30, %s3592_s30 }
 0x175   : > { %p2978_p0 = scmp.lt.s32.totalorder %s2976_s29, %s2969_s2 }
 0x176   : > { %p2972_p11 = pnand %p2970_p10, %p3340_p8 }
 0x177   : > { %p2979_p2 = por %p2978_p0, %p2977_p13 }
 0x178   : > { %p2973_p12 = pneg %p2972_p11 }
 0x17a   : > { %p2980_p5 = pnand %p2979_p2, %p2973_p12 }
 0x17c   : > { %2983 = shalt.err (!%p2980_p5)
}
 0x17d   : > { %s4045_s19 = sld [smem:[#allocation41_spill]]  ;;  %s4046_s0 = sld [smem:[#allocation40_spill]] }
 0x17e   : > { %s4047_s27 = sld [smem:[#allocation43_spill]]  ;;  %s2092_s21 = sadd.s32 4294967294, %s3162_s26  }
 0x17f   : > { %2437 = dma.hbm_to_vmem [thread:$0]  (!%p3324_p6), %s4006_s15, 16, %s3592_s30, [#allocation27]  }
 0x180   : > { %s54_s16 = sadd.s32 1, %s3158_s25  ;;  %s63_s18 = sadd.s32 1, %s3150_s23 }
 0x181   : > { %p56_p8 = scmp.ge.s32.totalorder %s54_s16, 2  ;;  %p71_p9 = scmp.eq.s32.totalorder %s3162_s26, 0 }
 0x182   : > { %p428_p13 = scmp.eq.s32.totalorder %s2092_s21, 1  ;;  %p2463_p2 = scmp.lt.s32.totalorder %s3162_s26, 2 }
 0x183   : > { %p70_p7 = scmp.ne.s32.totalorder %s3150_s23, %s4045_s19  ;;  %s4090_s16 = smov (%p56_p8, %s54_s16), 0 }
 0x184   : > { %p76_p1 = scmp.ne.s32.totalorder %s4045_s19, %s4046_s0  ;;  %s58_s30 = ssub.s32 %s3158_s25, %s4090_s16 }
 0x185   : > { %p3647_p4 = por %p71_p9, %p70_p7  ;;  %p422_p6 = scmp.eq.s32.totalorder %s4047_s27, 1 }
 0x186   : > { %p61_p3 = scmp.eq.s32.totalorder %s58_s30, 0  ;;  %p4049_p10 = scmp.eq.s32.totalorder %s4047_s27, 0 }
 0x187   : > { %p3662_p12 = por %p422_p6, %p70_p7  ;;  %p3669_p0 = por %p428_p13, %p76_p1 }
 0x188   : > { %p3658_p11 = por %p4049_p10, %p76_p1  ;;  %s3675_s2 = sand.u32 1, %s3150_s23  }
 0x189   : > { %s4051_s22 = scalar_select %p3662_p12, 1, 0 }
 0x18a   : > { %s3667_s17 = scalar_select %p61_p3, %s3150_s23, %s63_s18  }
 0x18b   : > { %s4052_s28 = scalar_select %p3669_p0, 1, 0 }
 0x18c   : > { %s2110_s29 = sshll.u32 %s3158_s25, 7  ;;  %s2109_s1 = sshll.u32 %s3675_s2, 3 }
 0x18d   : > { %s4053_s0 = sld [smem:[#allocation45_spill]]  ;;  %s616_s21 = scalar_lea.vmem [#allocation2], %s2109_s1 }
 0x18e   : > { %s624_s18 = sshll.u32 %s616_s21, 4  ;;  %p3686_p5 = pnand %p2463_p2, %p3647_p4  ;;  %s3690_s18 = int_to_ptr.vmem [resolvable:$true] %s624_s18 }
 0x18f   : > { %s613_s5 = scalar_lea.sflag [#allocation3], %s3675_s2 }
 0x190   : > { %p2986_p7 = pneg %p3686_p5 }
 0x193   : > { %s3682_s27 = scalar_lea.hbm %s4053_s0, %s2110_s29  ;;  %s2989_s1 = scalar_lea.hbm %s4053_s0, 256 }
 0x194   : > { %s2984_s24 = scalar_lea.hbm %s3682_s27, 128  ;;  %p2990_p4 = scmp.lt.u32.totalorder %s3682_s27, %s4053_s0 }
 0x195   : > { %p2985_p8 = scmp.ne.s32.totalorder %s3682_s27, %s2984_s24  ;;  %p2991_p6 = scmp.lt.u32.totalorder %s2989_s1, %s2984_s24 }
 0x196   : > { %p2993_p10 = scmp.lt.u32.totalorder %s2984_s24, %s3682_s27 }
 0x197   : > { %p2987_p9 = pnand %p2986_p7, %p2985_p8  ;;  %p2992_p3 = por %p2991_p6, %p2990_p4 }
 0x199   : > { %p2988_p1 = pneg %p2987_p9  ;;  %p2994_p13 = por %p2993_p10, %p2992_p3 }
 0x19b   : > { %p2995_p2 = pnand %p2994_p13, %p2988_p1 }
 0x19d   : > { %2998 = shalt.err (!%p2995_p2)
}
 0x19e   : > { %s2999_s4 = scalar_lea.vmem %s3690_s18, 128  ;;  %s3180_s29 = smov [#allocation2]  }
 0x19f   : > { %p3000_p8 = scmp.ne.s32.totalorder %s3690_s18, %s2999_s4  ;;  %s3004_s20 = sshll.u32 %s3180_s29, 4  ;;  %s3005_s20 = int_to_ptr.vmem [resolvable:$false] %s3004_s20 }
 0x1a0   : > { %s3006_s19 = scalar_lea.vmem %s3005_s20, 256  ;;  %p3007_p12 = scmp.lt.s32.totalorder %s3690_s18, %s3005_s20 }
 0x1a1   : > { %p3002_p9 = pnand %p3000_p8, %p2986_p7  ;;  %p3008_p4 = scmp.lt.s32.totalorder %s3006_s19, %s2999_s4 }
 0x1a3   : > { %p3003_p0 = pneg %p3002_p9  ;;  %p3009_p6 = por %p3008_p4, %p3007_p12 }
 0x1a5   : > { %p3010_p3 = pnand %p3009_p6, %p3003_p0 }
 0x1a7   : > { %3013 = shalt.err (!%p3010_p3)
}
 0x1a8   : > { %2441 = dma.hbm_to_vmem [thread:$0]  (!%p3686_p5), %s3682_s27, 128, %s3690_s18, %s613_s5  }
 0x1a9   : > { %s2174_s24 = sshll.u32 %s3158_s25, 8  ;;  %s4055_s1 = sshll.u32 %s3675_s2, 4 }
 0x1aa   : > { %s635_s21 = scalar_lea.vmem [#allocation5], %s4055_s1  ;;  %s631_s20 = sand.u32 1, %s3162_s26  }
 0x1ab   : > { %s642_s29 = sshll.u32 %s635_s21, 4  ;;  %s4056_s0 = sld [smem:[#allocation46_spill]]  ;;  %s3722_s29 = int_to_ptr.vmem [resolvable:$true] %s642_s29 }
 0x1ac   : > { %s3730_s7 = scalar_lea.sflag [#allocation6], %s631_s20 }
 0x1b1   : > { %s3728_s6 = scalar_lea.hbm %s4056_s0, %s2174_s24  ;;  %s3019_s27 = scalar_lea.hbm %s4056_s0, 512 }
 0x1b2   : > { %s3014_s8 = scalar_lea.hbm %s3728_s6, 256  ;;  %p3020_p10 = scmp.lt.u32.totalorder %s3728_s6, %s4056_s0 }
 0x1b3   : > { %p3015_p12 = scmp.ne.s32.totalorder %s3728_s6, %s3014_s8  ;;  %p3021_p13 = scmp.lt.u32.totalorder %s3019_s27, %s3014_s8 }
 0x1b4   : > { %p3023_p8 = scmp.lt.u32.totalorder %s3014_s8, %s3728_s6 }
 0x1b5   : > { %p3017_p0 = pnand %p3015_p12, %p2986_p7  ;;  %p3022_p2 = por %p3021_p13, %p3020_p10 }
 0x1b7   : > { %p3018_p1 = pneg %p3017_p0  ;;  %p3024_p9 = por %p3023_p8, %p3022_p2 }
 0x1b9   : > { %p3025_p4 = pnand %p3024_p9, %p3018_p1 }
 0x1bb   : > { %3028 = shalt.err (!%p3025_p4)
}
 0x1bc   : > { %s3029_s24 = scalar_lea.vmem %s3722_s29, 256  ;;  %s3181_s21 = smov [#allocation5]  }
 0x1bd   : > { %p3030_p6 = scmp.ne.s32.totalorder %s3722_s29, %s3029_s24  ;;  %s3034_s20 = sshll.u32 %s3181_s21, 4  ;;  %s3035_s20 = int_to_ptr.vmem [resolvable:$false] %s3034_s20 }
 0x1be   : > { %s3036_s4 = scalar_lea.vmem %s3035_s20, 512  ;;  %p3037_p0 = scmp.lt.s32.totalorder %s3722_s29, %s3035_s20 }
 0x1bf   : > { %p3032_p3 = pnand %p3030_p6, %p2986_p7  ;;  %p3038_p10 = scmp.lt.s32.totalorder %s3036_s4, %s3029_s24 }
 0x1c1   : > { %p3033_p12 = pneg %p3032_p3  ;;  %p3039_p13 = por %p3038_p10, %p3037_p0 }
 0x1c3   : > { %p3040_p2 = pnand %p3039_p13, %p3033_p12 }
 0x1c5   : > { %3043 = shalt.err (!%p3040_p2)
}
 0x1c6   : > { %s3182_s8 = smov 128   ;;  %s3183_s19 = smov 8  }
 0x1c7   : > { %2444 = dma.hbm_to_vmem [thread:$0]  (!%p3686_p5), %s3728_s6, 256, %s3722_s29, %s3730_s7, %s3182_s8, %s3182_s8, %s3183_s19  }
 0x1c8   : > { %s4057_s5 = sld [smem:[#allocation44_spill]] }
 0x1ce   : > { %p4058_p7 = scmp.ne.s32.totalorder %s4057_s5, 0 }
 0x1cf   : > { %s4059_s2 = sld [smem:[#allocation41_spill]] (!%p4058_p7) }
 0x1d0   : > { %654 = sbr.rel (%p4058_p7) target bundleno = 4187 (0x105b), region = 84 }
 0x1d5   : > { %s3759_s27 = sand.u32 (!%p4058_p7), 1, %s4059_s2  }
 0x1d6   : > { %s2115_s18 = sshll.u32 (!%p4058_p7), %s3759_s27, 3  ;;  %s657_s1 = scalar_lea.sflag (!%p4058_p7), [#allocation3], %s3759_s27 }
 0x1d7   : > { %s660_s24 = scalar_lea.vmem [#allocation2], %s2115_s18 }
 0x1d8   : > { %3097 = dma.done.wait (%p3658_p11), %s657_s1, 128  }
 0x1d9   : > { %3099 = vsyncadd (%p3658_p11), %s657_s1, 4294967168  ;;  %s4060_s6 = sld [smem:[#allocation43_spill]]  ;;  %s2116_s30 = sshll.u32 %s3759_s27, 4 }
 0x1da   : > { %s669_s21 = scalar_lea.vmem [#allocation5], %s2116_s30 }
 0x1df   : > { %s665_s7 = sand.u32 1, %s4060_s6  }
 0x1e0   : > { %s666_s29 = scalar_lea.sflag [#allocation6], %s665_s7 }
 0x1e1   : > { %3101 = dma.done.wait (%p3658_p11), %s666_s29, 256  }
 0x1e2   : > { %3103 = vsyncadd (%p3658_p11), %s666_s29, 4294967040  ;;  %p4061_p5 = scmp.eq.s32.totalorder %s4060_s6, 0 }
 0x1e4   : > { %3105 = dma.done.wait (%p4061_p5), [#allocation6], 16   ;;  %p4062_p1 = pmov %p4061_p5 }
 0x1e6   : > { %3107 = vsyncadd (%p4062_p1), [#allocation6], 4294967280  ;;  %p4063_p8 = pmov %p4062_p1 }
 0x1e7   : > { %p4064_p9 = pmov %p4062_p1 }
 0x1e8   : > { %3109 = dma.done.wait (%p4063_p8), [#allocation9], 272  }
 0x1e9   : > { %3111 = vsyncadd (%p4064_p9), [#allocation9], 4294967024  ;;  %p4065_p4 = pmov %p4062_p1 }
 0x1ea   : > { %p4066_p6 = pmov %p4062_p1 }
 0x1eb   : > { %3113 = dma.done.wait (%p4065_p4), [#allocation12], 272  }
 0x1ec   : > { %3115 = vsyncadd (%p4066_p6), [#allocation12], 4294967024  ;;  %p4067_p11 = pmov %p4062_p1 }
 0x1ed   : > { %p4068_p3 = pmov %p4062_p1 }
 0x1ee   : > { %3117 = dma.done.wait (%p4067_p11), [#allocation15], 272  }
 0x1ef   : > { %3119 = vsyncadd (%p4068_p3), [#allocation15], 4294967024  ;;  %p4069_p12 = pmov %p4062_p1 }
 0x1f0   : > { %p4070_p0 = pmov %p4062_p1 }
 0x1f1   : > { %3121 = dma.done.wait (%p4069_p12), [#allocation18], 32  }
 0x1f2   : > { %3123 = vsyncadd (%p4070_p0), [#allocation18], 4294967264  ;;  %p4071_p10 = pmov %p4070_p0 }
 0x1f3   : > { %p4072_p13 = pmov %p4070_p0 }
 0x1f4   : > { %3125 = dma.done.wait (%p4071_p10), [#allocation21], 272  }
 0x1f5   : > { %3127 = vsyncadd (%p4072_p13), [#allocation21], 4294967024  ;;  %p4073_p2 = pmov %p4070_p0 }
 0x1f6   : > { %p4074_p7 = pmov %p4070_p0 }
 0x1f7   : > { %3129 = dma.done.wait (%p4073_p2), [#allocation24], 1040  }
 0x1f8   : > { %3131 = vsyncadd (%p4074_p7), [#allocation24], 4294966256  ;;  %p4075_p5 = pmov %p4070_p0 }
 0x1f9   : > { %p4076_p1 = pmov %p4070_p0 }
 0x1fa   : > { %3133 = dma.done.wait (%p4075_p5), [#allocation27], 16  }
 0x1fb   : > { %3135 = vsyncadd (%p4076_p1), [#allocation27], 4294967280  ;;  %vm785_vm0 = vcmask 261120   ;;  %v780_v0 = vld [vmem:[%s660_s24] sm:$0xff]  ;;  %v781_v2 = vld [vmem:[%s669_s21] sm:$0xff]  ;;  %v3184_v22 = vmov 0.0  }
 0x1fc   : > { %v782_v1 = vld [vmem:[%s669_s21 + $0x8] sm:$0xff]  ;;  %v786_v3 = vsel %vm785_vm0, %v780_v0, 0.0  ;;  %v814_v5 = vsel %vm785_vm0, %v781_v2, 0.0  ;;  %2217 = vmatprep.subr.bf16.mxu0 %v3184_v22  ;;  %2239 = vmatprep.subr.bf16.mxu1 %v3184_v22  ;;  %vm3185_vm1 = vmmov 0   ;;  %v2132_v34 = vld [vmem:[#allocation7] ss:$0 sm:$0xff] }
 0x1fd   : > { %v817_v4 = vsel %vm785_vm0, %v782_v1, 0.0  ;;  %787 = vadd.xlane.f32.xlu0 %v786_v3  ;;  %v2554_v21 = vld [vmem:[#allocation10] sm:$0xff]   ;;  %v2555_v23 = vld [vmem:[#allocation10 + $0x8] sm:$0xff]   ;;  %2221 = vmatprep.mubr.msk.bf16.mxu0 %vm3185_vm1, %v3184_v22  ;;  %v2133_v36 = vld [vmem:[#allocation8] ss:$0 sm:$0xff]  ;;  %s3186_s3 = smov 120  }
 0x1fe   : > { %818 = vadd.xlane.f32.xlu1 %v817_v4  ;;  %2218 = vmatpush3.bf16.msra.mxu0 %v2554_v21  ;;  %v2556_v43 = vld [vmem:[#allocation13] sm:$0xff]   ;;  %v2557_v47 = vld [vmem:[#allocation13 + $0x8] sm:$0xff]   ;;  %v2134_v51 = vld [vmem:[#allocation11] ss:$0 sm:$0xff]  ;;  %vm990_vm2 = vcmask 64512   ;;  %vm1037_vm4 = vcmask 130048  }
 0x1ff   : > { %2219 = vmatprep.subr.bf16.mxu0 %v3184_v22  ;;  %2241 = vmatprep.mubr.msk.bf16.mxu1 %vm3185_vm1, %v3184_v22  ;;  %v2138_v58 = vld [vmem:[#allocation14] ss:$0 sm:$0xff]  ;;  %s3187_s20 = smov 96   ;;  %s3188_s4 = smov 88   ;;  %vm1214_vm5 = vcmask 1043456  }
 0x200   : > { %s3189_s8 = smov 112   ;;  %s3190_s19 = smov 80  }
 0x201   : > { %815 = vadd.xlane.f32.xlu0 %v814_v5  ;;  %s3191_s5 = smov 104   ;;  %s3192_s2 = smov 72  }
 0x202   : > { %2220 = vmatpush3.bf16.msra.mxu0 %v2555_v23  ;;  %s4077_s1 = sld [smem:[#allocation42_spill]]  ;;  %s778_s6 = scalar_lea.vmem [#allocation28], %s2115_s18 }
 0x203   : > { %2225 = vmatprep.subr.bf16.mxu0 %v3184_v22  ;;  %s1855_s7 = sshll.u32 %s778_s6, 4  ;;  %s4078_s21 = sld [smem:[#allocation54_spill]]  ;;  %s3943_s7 = int_to_ptr.vmem [resolvable:$true] %s1855_s7 }
 0x204   : > { %s3044_s18 = scalar_lea.vmem %s3943_s7, 128  ;;  %p4080_p9 = scmp.ne.s32.totalorder %s4051_s22, 0 }
 0x205   : > { %p3045_p8 = scmp.ne.s32.totalorder %s3943_s7, %s3044_s18 }
 0x207   : > { %p3046_p4 = pnand %p3045_p8, %p4080_p9 }
 0x208   : > { %s2171_s24 = sshll.u32 %s4077_s1, 7 }
 0x209   : > { %p3047_p6 = pneg %p3046_p4 }
 0x28a   : > { %v788_v6 = vpop.xlane.xlu0 %787 }
 0x28b   : > { %v819_v7 = vpop.xlane.xlu1 %818  ;;  %v790_v8 = vmul.f32 0.03125, %v788_v6  ;;  %v982_v6 = vlaneseq }
 0x28c   : > { %v821_v9 = vmul.f32 0.03125, %v819_v7 }
 0x28d   : > { %v791_v10 = vsub.f32 %v780_v0, %v790_v8  ;;  %v983_v7 = vshrl.u32 %v982_v6, 7  ;;  %v987_v8 = vand.u32 127, %v982_v6 }
 0x28e   : > { %v823_v11 = vsub.f32 %v782_v1, %v821_v9  ;;  %v816_v12 = vpop.xlane.xlu0 %815 }
 0x28f   : > { %v820_v13 = vmul.f32 0.03125, %v816_v12  ;;  %v792_v14 = vmul.f32 %v791_v10, %v791_v10  ;;  %vm988_vm3 = vcmp.gt.s32.totalorder %v987_v8, %v983_v7 }
 0x290   : > { %v825_v15 = vmul.f32 %v823_v11, %v823_v11  ;;  %v3852_v9 = vsel %vm988_vm3, -1e+30, %v3184_v22 }
 0x291   : > { %v822_v16 = vsub.f32 %v781_v2, %v820_v13  ;;  %v793_v17 = vsel %vm785_vm0, %v792_v14, 0.0 }
 0x292   : > { %794 = vadd.xlane.f32.xlu1 %v793_v17  ;;  %v829_v18 = vsel %vm785_vm0, %v825_v15, 0.0 }
 0x293   : > { %v824_v19 = vmul.f32 %v822_v16, %v822_v16 }
 0x295   : > { %v826_v20 = vsel %vm785_vm0, %v824_v19, 0.0 }
 0x296   : > { %830 = vadd.xlane.f32.xlu1 %v829_v18  ;;  %827 = vadd.xlane.f32.xlu0 %v826_v20 }
 0x31f   : > { %v795_v24 = vpop.xlane.xlu1 %794 }
 0x320   : > { %v796_v25 = vmul.f32 0.03125, %v795_v24 }
 0x322   : > { %v797_v26 = vadd.f32 1e-05, %v796_v25 }
 0x323   : > { %v831_v27 = vpop.xlane.xlu1 %830  ;;  %v828_v28 = vpop.xlane.xlu0 %827 }
 0x324   : > { %2568 = vrsqrt.f32 %v797_v26  ;;  %v833_v29 = vmul.f32 0.03125, %v831_v27  ;;  %v832_v30 = vmul.f32 0.03125, %v828_v28 }
 0x326   : > { %v835_v31 = vadd.f32 1e-05, %v833_v29  ;;  %v834_v32 = vadd.f32 1e-05, %v832_v30 }
 0x328   : > { %2570 = vrsqrt.f32 %v835_v31 }
 0x329   : > { %2572 = vrsqrt.f32 %v834_v32 }
 0x32e   : > { %v2569_v33 = vpop.eup %2568 }
 0x32f   : > { %v799_v35 = vmul.f32 %v2569_v33, %v791_v10 }
 0x331   : > { %v806_v37 = vmul.f32 %v2132_v34, %v799_v35 }
 0x332   : > { %v2571_v38 = vpop.eup %2570 }
 0x333   : > { %v2573_v39 = vpop.eup %2572  ;;  %v839_v40 = vmul.f32 %v2571_v38, %v823_v11  ;;  %v3821_v41 = vadd.f32 %v2133_v36, %v806_v37  ;;  %v1210_v38 = vld [vmem:[#allocation16 + $0x4] sm:$0xf] }
 0x334   : > { %v838_v42 = vmul.f32 %v2573_v39, %v822_v16  ;;  %v1216_v39 = vsel %vm1214_vm5, %v1210_v38, 0 }
 0x335   : > { %v844_v44 = vpack.c.bf16 %v3821_v41, %v3821_v41  ;;  %v841_v45 = vmul.f32 %v2132_v34, %v839_v40 }
 0x336   : > { %v840_v46 = vmul.f32 %v2132_v34, %v838_v42 }
 0x337   : > { %2222 = vmatmul.mubr.msk.bf16.vlgmr.msra.gmra.mrb[0].mxu0 %vm785_vm0, %v844_v44  ;;  %v843_v49 = vadd.f32 %v2133_v36, %v841_v45  ;;  %v1098_v44 = vld [vmem:[#allocation16] sm:$0xf] }
 0x338   : > { %2226 = vmatpush3.bf16.msra.mxu0 %v2556_v43  ;;  %2229 = vmatprep.mubr.msk.bf16.mxu0 %vm3185_vm1, %v3184_v22  ;;  %v842_v48 = vadd.f32 %v2133_v36, %v840_v46 }
 0x339   : > { %2227 = vmatprep.subr.bf16.mxu0 %v3184_v22 }
 0x33a   : > { %v911_v50 = vpack.c.bf16 %v843_v49, %v842_v48 }
 0x33c   : > { %2228 = vmatpush3.bf16.msra.mxu0 %v2557_v47  ;;  %v1262_v47 = vsel %vm1214_vm5, %v1098_v44, 0 }
 0x33d   : > { %2233 = vmatprep.subr.bf16.mxu0 %v3184_v22 }
 0x33f   : > { %2230 = vmatmul.mubr.msk.bf16.vlgmr.msra.gmra.mrb[4].mxu0 %vm785_vm0, %v911_v50 }
 0x340   : > { %2235 = vmatprep.mubr.msk.bf16.mxu0 %vm3185_vm1, %v3184_v22 }
 0x40a   : > { %v905_v52 = vpop.f32.mrb[0].mxu0 }
 0x40b   : > { %v906_v53 = vadd.f32 %v2134_v51, %v905_v52  ;;  %v2223_v54 = vpop.f32.mrb[1].mxu0 }
 0x40c   : > { %v908_v55 = vpop.f32.mrb[2].mxu0 }
 0x40d   : > { %v3833_v56 = vpack.c.bf16 %v906_v53, %v906_v53  ;;  %v2224_v57 = vpop.f32.mrb[3].mxu0 }
 0x40f   : > { %1100 = vrot.lane.b32.xlu1 %v3833_v56, %s3186_s3 }
 0x412   : > { %v972_v59 = vpop.f32.mrb[4].mxu0 }
 0x413   : > { %v2231_v60 = vpop.f32.mrb[5].mxu0  ;;  %v973_v62 = vadd.f32 %v2138_v58, %v972_v59 }
 0x414   : > { %v975_v61 = vpop.f32.mrb[6].mxu0 }
 0x415   : > { %v976_v63 = vadd.f32 %v2138_v58, %v975_v61  ;;  %v2232_v0 = vpop.f32.mrb[7].mxu0 }
 0x417   : > { %v3836_v1 = vpack.c.bf16 %v976_v63, %v973_v62 }
 0x419   : > { %1102 = vrot.lane.b32.xlu0 %v3836_v1, %s3186_s3  ;;  %v995_v2 = vsel %vm990_vm2, %v3836_v1, 0  ;;  %s4079_s3 = smov %s4078_s21 }
 0x41a   : > { %2234 = vmatpush3.bf16.xpose.msra.mxu0 %v995_v2 }
 0x41b   : > { %2245 = vmatprep.subr.bf16.mxu0 %v3184_v22 }
 0x421   : > { %2236 = vmatmul.mubr.msk.bf16.vlgmr.msra.gmra.mrb[8].mxu0 %vm990_vm2, %v3833_v56 }
 0x422   : > { %2247 = vmatprep.mubr.msk.bf16.mxu0 %vm3185_vm1, %v3184_v22 }
 0x481   : > { %v1101_v5 = vpop.permute.xlu1 %1100 }
 0x48b   : > { %v1103_v3 = vpop.permute.xlu0 %1102 }
 0x48c   : > { %v1108_v4 = vsel %vm990_vm2, %v1103_v3, 0 }
 0x48d   : > { %2246 = vmatpush3.bf16.xpose.msra.mxu0 %v1108_v4 }
 0x48e   : > { %2257 = vmatprep.subr.bf16.mxu0 %v3184_v22 }
 0x494   : > { %2248 = vmatmul.mubr.msk.bf16.vlgmr.msra.gmra.mrb[12].mxu0 %vm990_vm2, %v1101_v5 }
 0x495   : > { %2259 = vmatprep.mubr.msk.bf16.mxu0 %vm3185_vm1, %v3184_v22  ;;  %2258 = vmatpush3.bf16.msra.mxu0 %v1216_v39 }
 0x496   : > { %2269 = vmatprep.subr.bf16.mxu0 %v3184_v22 }
 0x4f4   : > { %v1031_v10 = vpop.f32.mrb[8].mxu0 }
 0x4f5   : > { %v1032_v11 = vadd.f32 %v1031_v10, %v3852_v9  ;;  %v2237_v12 = vpop.f32.mrb[9].mxu0 }
 0x4f6   : > { %v1034_v13 = vpop.f32.mrb[10].mxu0 }
 0x4f7   : > { %v2238_v14 = vpop.f32.mrb[11].mxu0  ;;  %v1038_v15 = vsel %vm1037_vm4, %v1032_v11, -inf }
 0x4f8   : > { %1039 = vmax.xlane.f32.xlu1 %v1038_v15 }
 0x567   : > { %v1144_v16 = vpop.f32.mrb[12].mxu0 }
 0x568   : > { %v1145_v17 = vadd.f32 %v1144_v16, %v3852_v9  ;;  %v2249_v18 = vpop.f32.mrb[13].mxu0 }
 0x569   : > { %v1147_v19 = vpop.f32.mrb[14].mxu0 }
 0x56a   : > { %v2250_v20 = vpop.f32.mrb[15].mxu0  ;;  %v1150_v21 = vsel %vm1037_vm4, %v1145_v17, -inf }
 0x56b   : > { %1151 = vmax.xlane.f32.xlu0 %v1150_v21 }
 0x585   : > { %v1040_v23 = vpop.xlane.xlu1 %1039 }
 0x586   : > { %v1041_v24 = vsub.f32 %v1032_v11, %v1040_v23 }
 0x588   : > { %v1042_v25 = vmul.f32 1.442695, %v1041_v24 }
 0x58a   : > { %2574 = vpow2.f32 %v1042_v25 }
 0x594   : > { %v2575_v26 = vpop.eup %2574 }
 0x595   : > { %v1044_v27 = vsel %vm1037_vm4, %v2575_v26, 0.0 }
 0x596   : > { %1045 = vadd.xlane.f32.xlu0 %v1044_v27 }
 0x5ac   : > { %1051 = vrot.lane.b32.xlu0 %v3836_v1, %s3187_s20  ;;  %s3941_s20 = scalar_lea.hbm %s4078_s21, %s2171_s24 }
 0x5f8   : > { %v1152_v28 = vpop.xlane.xlu0 %1151 }
 0x5f9   : > { %v1153_v29 = vsub.f32 %v1145_v17, %v1152_v28  ;;  %v1414_v28 = vld [vmem:[#allocation16 + $0x8] sm:$0xf] }
 0x5fb   : > { %v1154_v30 = vmul.f32 1.442695, %v1153_v29  ;;  %v1419_v29 = vsel %vm1214_vm5, %v1414_v28, 0  ;;  %v2156_v28 = vld [vmem:[#allocation20] ss:$0 sm:$0xff] }
 0x5fd   : > { %2576 = vpow2.f32 %v1154_v30 }
 0x607   : > { %v2577_v31 = vpop.eup %2576 }
 0x608   : > { %v1156_v32 = vsel %vm1037_vm4, %v2577_v31, 0.0 }
 0x609   : > { %1157 = vadd.xlane.f32.xlu1 %v1156_v32 }
 0x61a   : > { %1162 = vrot.lane.b32.xlu1 %v3836_v1, %s3188_s4  ;;  %s1841_s4 = scalar_lea.sflag [#allocation4], %s3759_s27 }
 0x61e   : > { %1306 = vrot.lane.b32.xlu1 %v3836_v1, %s3189_s8 }
 0x622   : > { %1304 = vrot.lane.b32.xlu1 %v3833_v56, %s3189_s8  ;;  %s3193_s8 = smov [#allocation28]  }
 0x623   : > { %v1046_v33 = vpop.xlane.xlu0 %1045 }
 0x624   : > { %2578 = vrcp.f32 %v1046_v33 }
 0x627   : > { %v1052_v34 = vpop.permute.xlu0 %1051 }
 0x628   : > { %2240 = vmatpush3.bf16.msra.mxu1 %v1052_v34 }
 0x629   : > { %2251 = vmatprep.subr.bf16.mxu1 %v3184_v22 }
 0x62e   : > { %v2579_v35 = vpop.eup %2578 }
 0x62f   : > { %v1048_v36 = vmul.f32 %v2579_v35, %v2575_v26 }
 0x631   : > { %v1049_v37 = vpack.c.bf16 %v1048_v36, %v1048_v36 }
 0x633   : > { %2242 = vmatmul.mubr.msk.bf16.vlgmr.msra.gmra.mrb[0].mxu1 %vm1037_vm4, %v1049_v37 }
 0x634   : > { %2253 = vmatprep.mubr.msk.bf16.mxu1 %vm3185_vm1, %v3184_v22 }
 0x696   : > { %v1158_v40 = vpop.xlane.xlu1 %1157 }
 0x697   : > { %2580 = vrcp.f32 %v1158_v40 }
 0x69a   : > { %v1163_v42 = vpop.permute.xlu1 %1162 }
 0x69b   : > { %2252 = vmatpush3.bf16.msra.mxu1 %v1163_v42 }
 0x69c   : > { %2263 = vmatprep.subr.bf16.mxu1 %v3184_v22 }
 0x69e   : > { %v1307_v53 = vpop.permute.xlu1 %1306 }
 0x69f   : > { %v1312_v59 = vsel %vm990_vm2, %v1307_v53, 0 }
 0x6a1   : > { %v2581_v43 = vpop.eup %2580 }
 0x6a2   : > { %v1160_v45 = vmul.f32 %v2581_v43, %v2577_v31  ;;  %v1305_v61 = vpop.permute.xlu1 %1304 }
 0x6a4   : > { %v1161_v46 = vpack.c.bf16 %v1160_v45, %v1160_v45 }
 0x6a6   : > { %2254 = vmatmul.mubr.msk.bf16.vlgmr.msra.gmra.mrb[4].mxu1 %vm1037_vm4, %v1161_v46 }
 0x6a7   : > { %2264 = vmatpush3.bf16.msra.mxu1 %v1262_v47  ;;  %2265 = vmatprep.mubr.msk.bf16.mxu1 %vm3185_vm1, %v3184_v22  ;;  %v1572_v47 = vld [vmem:[#allocation16 + $0xc] sm:$0xf] }
 0x6a8   : > { %2275 = vmatprep.subr.bf16.mxu1 %v3184_v22 }
 0x706   : > { %v1091_v48 = vpop.f32.mrb[0].mxu1 }
 0x707   : > { %v1097_v49 = vpack.c.bf16 %v1091_v48, %v1091_v48  ;;  %v2243_v50 = vpop.f32.mrb[1].mxu1 }
 0x708   : > { %v1094_v51 = vpop.f32.mrb[2].mxu1 }
 0x709   : > { %v2244_v52 = vpop.f32.mrb[3].mxu1  ;;  %2266 = vmatmul.mubr.msk.bf16.vlgmr.msra.gmra.mrb[8].mxu1 %vm990_vm2, %v1097_v49 }
 0x70a   : > { %2277 = vmatprep.mubr.msk.bf16.mxu1 %vm3185_vm1, %v3184_v22 }
 0x779   : > { %v1202_v54 = vpop.f32.mrb[4].mxu1 }
 0x77a   : > { %v1208_v55 = vpack.c.bf16 %v1202_v54, %v1202_v54  ;;  %v2255_v57 = vpop.f32.mrb[5].mxu1 }
 0x77b   : > { %v1205_v58 = vpop.f32.mrb[6].mxu1 }
 0x77c   : > { %v2256_v60 = vpop.f32.mrb[7].mxu1  ;;  %2260 = vmatmul.mubr.msk.bf16.vlgmr.msra.gmra.mrb[16].mxu0 %vm990_vm2, %v1208_v55 }
 0x77d   : > { %2270 = vmatpush3.bf16.xpose.msra.mxu0 %v1312_v59  ;;  %2271 = vmatprep.mubr.msk.bf16.mxu0 %vm3185_vm1, %v3184_v22 }
 0x77e   : > { %2281 = vmatprep.subr.bf16.mxu0 %v3184_v22 }
 0x784   : > { %2272 = vmatmul.mubr.msk.bf16.vlgmr.msra.gmra.mrb[20].mxu0 %vm990_vm2, %v1305_v61 }
 0x785   : > { %2283 = vmatprep.mubr.msk.bf16.mxu0 %vm3185_vm1, %v3184_v22  ;;  %2282 = vmatpush3.bf16.msra.mxu0 %v1419_v29 }
 0x786   : > { %2293 = vmatprep.subr.bf16.mxu0 %v3184_v22 }
 0x7dc   : > { %v1298_v62 = vpop.f32.mrb[8].mxu1 }
 0x7dd   : > { %v2267_v63 = vpop.f32.mrb[9].mxu1 }
 0x7de   : > { %v1301_v0 = vpop.f32.mrb[10].mxu1 }
 0x7df   : > { %v2268_v2 = vpop.f32.mrb[11].mxu1  ;;  %v2154_v0 = vld [vmem:[#allocation17] ss:$0 sm:$0xff] }
 0x84f   : > { %v1252_v3 = vpop.f32.mrb[16].mxu0 }
 0x850   : > { %v3887_v4 = vadd.f32 %v1298_v62, %v1252_v3  ;;  %v2261_v5 = vpop.f32.mrb[17].mxu0 }
 0x851   : > { %v1255_v6 = vpop.f32.mrb[18].mxu0 }
 0x852   : > { %v2262_v7 = vpop.f32.mrb[19].mxu0 }
 0x857   : > { %v1348_v8 = vpop.f32.mrb[20].mxu0 }
 0x858   : > { %v1349_v10 = vadd.f32 %v1348_v8, %v3852_v9  ;;  %v2273_v11 = vpop.f32.mrb[21].mxu0 }
 0x859   : > { %v1351_v12 = vpop.f32.mrb[22].mxu0 }
 0x85a   : > { %v2274_v13 = vpop.f32.mrb[23].mxu0  ;;  %v1354_v14 = vsel %vm1037_vm4, %v1349_v10, -inf }
 0x85b   : > { %1355 = vmax.xlane.f32.xlu0 %v1354_v14 }
 0x871   : > { %1366 = vrot.lane.b32.xlu0 %v3836_v1, %s3190_s19  ;;  %s3048_s19 = sshll.u32 %s3193_s8, 4  ;;  %s3049_s19 = int_to_ptr.vmem [resolvable:$false] %s3048_s19 }
 0x872   : > { %p3051_p11 = scmp.lt.s32.totalorder %s3943_s7, %s3049_s19 }
 0x875   : > { %1462 = vrot.lane.b32.xlu0 %v3833_v56, %s3191_s5 }
 0x8e8   : > { %v1356_v15 = vpop.xlane.xlu0 %1355 }
 0x8e9   : > { %v1357_v16 = vsub.f32 %v1349_v10, %v1356_v15  ;;  %v2558_v15 = vld [vmem:[#allocation22] sm:$0xff]  }
 0x8eb   : > { %v1358_v17 = vmul.f32 1.442695, %v1357_v16  ;;  %v2559_v16 = vld [vmem:[#allocation22 + $0x8] sm:$0xff]  }
 0x8ec   : > { %v1367_v18 = vpop.permute.xlu0 %1366 }
 0x8ed   : > { %2582 = vpow2.f32 %v1358_v17  ;;  %2276 = vmatpush3.bf16.msra.mxu1 %v1367_v18  ;;  %v2560_v17 = vld [vmem:[#allocation25] sm:$0xff]   ;;  %v2561_v18 = vld [vmem:[#allocation25 + $0x8] sm:$0xff]  }
 0x8ee   : > { %2287 = vmatprep.subr.bf16.mxu1 %v3184_v22 }
 0x8f0   : > { %v1463_v27 = vpop.permute.xlu0 %1462 }
 0x8f7   : > { %v2583_v19 = vpop.eup %2582 }
 0x8f8   : > { %v1360_v20 = vsel %vm1037_vm4, %v2583_v19, 0.0 }
 0x8f9   : > { %1361 = vadd.xlane.f32.xlu1 %v1360_v20  ;;  %v2564_v20 = vld [vmem:[#allocation25 + $0x20] sm:$0xff]  }
 0x90a   : > { %1464 = vrot.lane.b32.xlu1 %v3836_v1, %s3191_s5  ;;  %s3050_s5 = scalar_lea.vmem %s3049_s19, 256 }
 0x90b   : > { %p3052_p3 = scmp.lt.s32.totalorder %s3050_s5, %s3044_s18 }
 0x90d   : > { %p3053_p12 = por %p3052_p3, %p3051_p11 }
 0x90f   : > { %p3054_p0 = pnand %p3053_p12, %p3047_p6 }
 0x986   : > { %v1362_v21 = vpop.xlane.xlu1 %1361 }
 0x987   : > { %2584 = vrcp.f32 %v1362_v21  ;;  %v2565_v21 = vld [vmem:[#allocation25 + $0x28] sm:$0xff]  }
 0x98a   : > { %v1465_v25 = vpop.permute.xlu1 %1464 }
 0x98b   : > { %v1470_v26 = vsel %vm990_vm2, %v1465_v25, 0 }
 0x991   : > { %v2585_v23 = vpop.eup %2584 }
 0x992   : > { %v1364_v24 = vmul.f32 %v2585_v23, %v2583_v19  ;;  %v2563_v19 = vld [vmem:[#allocation25 + $0x18] sm:$0xff]  }
 0x994   : > { %v1365_v56 = vpack.c.bf16 %v1364_v24, %v1364_v24 }
 0x996   : > { %2278 = vmatmul.mubr.msk.bf16.vlgmr.msra.gmra.mrb[12].mxu1 %vm1037_vm4, %v1365_v56 }
 0x997   : > { %2288 = vmatpush3.bf16.xpose.msra.mxu1 %v1470_v26  ;;  %2289 = vmatprep.mubr.msk.bf16.mxu1 %vm3185_vm1, %v3184_v22  ;;  %v2155_v26 = vld [vmem:[#allocation19] ss:$0 sm:$0xff] }
 0x998   : > { %2299 = vmatprep.subr.bf16.mxu1 %v3184_v22 }
 0x99e   : > { %2290 = vmatmul.mubr.msk.bf16.vlgmr.msra.gmra.mrb[16].mxu1 %vm990_vm2, %v1463_v27 }
 0x99f   : > { %2301 = vmatprep.mubr.msk.bf16.mxu1 %vm3185_vm1, %v3184_v22 }
 0xa69   : > { %v1406_v30 = vpop.f32.mrb[12].mxu1 }
 0xa6a   : > { %v1412_v31 = vpack.c.bf16 %v1406_v30, %v1406_v30  ;;  %v2279_v32 = vpop.f32.mrb[13].mxu1 }
 0xa6b   : > { %v1409_v33 = vpop.f32.mrb[14].mxu1  ;;  %v2566_v32 = vld [vmem:[#allocation25 + $0x30] sm:$0xff]  }
 0xa6c   : > { %v2280_v34 = vpop.f32.mrb[15].mxu1  ;;  %2284 = vmatmul.mubr.msk.bf16.vlgmr.msra.gmra.mrb[24].mxu0 %vm990_vm2, %v1412_v31  ;;  %v2567_v33 = vld [vmem:[#allocation25 + $0x38] sm:$0xff]  }
 0xa6d   : > { %2295 = vmatprep.mubr.msk.bf16.mxu0 %vm3185_vm1, %v3184_v22  ;;  %v2157_v34 = vld [vmem:[#allocation23] ss:$0 sm:$0xff] }
 0xa71   : > { %v1506_v35 = vpop.f32.mrb[16].mxu1 }
 0xa72   : > { %v1507_v36 = vadd.f32 %v1506_v35, %v3852_v9  ;;  %v2291_v37 = vpop.f32.mrb[17].mxu1  ;;  %v1577_v9 = vsel %vm1214_vm5, %v1572_v47, 0 }
 0xa73   : > { %v1509_v38 = vpop.f32.mrb[18].mxu1  ;;  %2300 = vmatpush3.bf16.msra.mxu1 %v1577_v9 }
 0xa74   : > { %v2292_v39 = vpop.f32.mrb[19].mxu1  ;;  %v1512_v40 = vsel %vm1037_vm4, %v1507_v36, -inf  ;;  %2313 = vmatprep.subr.bf16.mxu1 %v3184_v22 }
 0xa75   : > { %1513 = vmax.xlane.f32.xlu1 %v1512_v40 }
 0xb02   : > { %v1514_v42 = vpop.xlane.xlu1 %1513 }
 0xb03   : > { %v1515_v43 = vsub.f32 %v1507_v36, %v1514_v42 }
 0xb05   : > { %v1516_v44 = vmul.f32 1.442695, %v1515_v43  ;;  %v2161_v43 = vld [vmem:[#allocation26] ss:$0 sm:$0xff] }
 0xb07   : > { %2586 = vpow2.f32 %v1516_v44 }
 0xb11   : > { %v2587_v45 = vpop.eup %2586 }
 0xb12   : > { %v1518_v46 = vsel %vm1037_vm4, %v2587_v45, 0.0 }
 0xb13   : > { %1519 = vadd.xlane.f32.xlu0 %v1518_v46 }
 0xb29   : > { %1524 = vrot.lane.b32.xlu0 %v3836_v1, %s3192_s2 }
 0xb3f   : > { %v1455_v48 = vpop.f32.mrb[24].mxu0 }
 0xb40   : > { %v1461_v49 = vadd.f32 %v1455_v48, %v3887_v4  ;;  %v2285_v50 = vpop.f32.mrb[25].mxu0 }
 0xb41   : > { %v1458_v51 = vpop.f32.mrb[26].mxu0 }
 0xb42   : > { %v2286_v52 = vpop.f32.mrb[27].mxu0 }
 0xba0   : > { %v1520_v53 = vpop.xlane.xlu0 %1519 }
 0xba1   : > { %2588 = vrcp.f32 %v1520_v53 }
 0xba4   : > { %v1525_v54 = vpop.permute.xlu0 %1524 }
 0xba5   : > { %2294 = vmatpush3.bf16.msra.mxu0 %v1525_v54 }
 0xba6   : > { %2305 = vmatprep.subr.bf16.mxu0 %v3184_v22 }
 0xbab   : > { %v2589_v55 = vpop.eup %2588 }
 0xbac   : > { %v1522_v1 = vmul.f32 %v2589_v55, %v2587_v45 }
 0xbae   : > { %v1523_v57 = vpack.c.bf16 %v1522_v1, %v1522_v1 }
 0xbb0   : > { %2296 = vmatmul.mubr.msk.bf16.vlgmr.msra.gmra.mrb[28].mxu0 %vm1037_vm4, %v1523_v57 }
 0xbb1   : > { %2309 = vmatprep.mubr.msk.bf16.mxu0 %vm3185_vm1, %v3184_v22  ;;  %2306 = vmatpush3.bf16.msra.mxu0 %v2558_v15 }
 0xbb2   : > { %2307 = vmatprep.subr.bf16.mxu0 %v3184_v22 }
 0xbb5   : > { %2308 = vmatpush3.bf16.msra.mxu0 %v2559_v16 }
 0xc83   : > { %v1564_v58 = vpop.f32.mrb[28].mxu0 }
 0xc84   : > { %v1570_v59 = vpack.c.bf16 %v1564_v58, %v1564_v58  ;;  %v2297_v60 = vpop.f32.mrb[29].mxu0 }
 0xc85   : > { %v1567_v61 = vpop.f32.mrb[30].mxu0 }
 0xc86   : > { %v2298_v62 = vpop.f32.mrb[31].mxu0  ;;  %2302 = vmatmul.mubr.msk.bf16.vlgmr.msra.gmra.mrb[20].mxu1 %vm990_vm2, %v1570_v59 }
 0xc87   : > { %2329 = vmatprep.mubr.msk.bf16.mxu1 %vm3185_vm1, %v3184_v22  ;;  %2314 = vmatpush3.bf16.msra.mxu1 %v2560_v17 }
 0xc88   : > { %2315 = vmatprep.subr.bf16.mxu1 %v3184_v22 }
 0xc8b   : > { %2316 = vmatpush3.bf16.msra.mxu1 %v2561_v18 }
 0xc8c   : > { %2317 = vmatprep.subr.bf16.mxu1 %v3184_v22 }
 0xd59   : > { %v1613_v63 = vpop.f32.mrb[20].mxu1 }
 0xd5a   : > { %v1619_v2 = vadd.f32 %v1613_v63, %v1461_v49  ;;  %v2303_v3 = vpop.f32.mrb[21].mxu1 }
 0xd5b   : > { %v1616_v4 = vpop.f32.mrb[22].mxu1 }
 0xd5c   : > { %v1627_v5 = vadd.f32 %v2154_v0, %v1619_v2  ;;  %v2304_v6 = vpop.f32.mrb[23].mxu1 }
 0xd5e   : > { %v1628_v7 = vadd.f32 %v1627_v5, %v3821_v41  ;;  %v2562_v41 = vld [vmem:[#allocation25 + $0x10] sm:$0xff]  }
 0xd5f   : > { %2318 = vmatpush3.bf16.msra.mxu1 %v2562_v41 }
 0xd60   : > { %v1631_v8 = vsel %vm785_vm0, %v1628_v7, 0.0  ;;  %2319 = vmatprep.subr.bf16.mxu1 %v3184_v22 }
 0xd61   : > { %1632 = vadd.xlane.f32.xlu1 %v1631_v8 }
 0xd63   : > { %2320 = vmatpush3.bf16.msra.mxu1 %v2563_v19 }
 0xd64   : > { %2321 = vmatprep.subr.bf16.mxu1 %v3184_v22 }
 0xd67   : > { %2322 = vmatpush3.bf16.msra.mxu1 %v2564_v20 }
 0xd68   : > { %2323 = vmatprep.subr.bf16.mxu1 %v3184_v22 }
 0xd6b   : > { %2324 = vmatpush3.bf16.msra.mxu1 %v2565_v21 }
 0xd6c   : > { %2325 = vmatprep.subr.bf16.mxu1 %v3184_v22 }
 0xd6f   : > { %2326 = vmatpush3.bf16.msra.mxu1 %v2566_v32 }
 0xd70   : > { %2327 = vmatprep.subr.bf16.mxu1 %v3184_v22 }
 0xd73   : > { %2328 = vmatpush3.bf16.msra.mxu1 %v2567_v33 }
 0xdee   : > { %v1633_v10 = vpop.xlane.xlu1 %1632 }
 0xdef   : > { %v1634_v11 = vmul.f32 0.03125, %v1633_v10 }
 0xdf1   : > { %v1635_v12 = vsub.f32 %v1628_v7, %v1634_v11 }
 0xdf3   : > { %v1636_v13 = vmul.f32 %v1635_v12, %v1635_v12 }
 0xdf5   : > { %v1637_v14 = vsel %vm785_vm0, %v1636_v13, 0.0 }
 0xdf6   : > { %1638 = vadd.xlane.f32.xlu1 %v1637_v14 }
 0xe83   : > { %v1639_v23 = vpop.xlane.xlu1 %1638 }
 0xe84   : > { %v1640_v24 = vmul.f32 0.03125, %v1639_v23 }
 0xe86   : > { %v1641_v25 = vadd.f32 1e-05, %v1640_v24 }
 0xe88   : > { %2590 = vrsqrt.f32 %v1641_v25 }
 0xe92   : > { %v2591_v56 = vpop.eup %2590 }
 0xe93   : > { %v1643_v27 = vmul.f32 %v2591_v56, %v1635_v12 }
 0xe95   : > { %v1650_v29 = vmul.f32 %v2155_v26, %v1643_v27 }
 0xe97   : > { %v1657_v30 = vadd.f32 %v2156_v28, %v1650_v29 }
 0xe99   : > { %v1658_v31 = vpack.c.bf16 %v1657_v30, %v1657_v30 }
 0xe9b   : > { %2310 = vmatmul.mubr.msk.bf16.vlgmr.msra.gmra.mrb[32].mxu0 %vm785_vm0, %v1658_v31 }
 0xf6e   : > { %v1719_v35 = vpop.f32.mrb[32].mxu0 }
 0xf6f   : > { %v1720_v36 = vadd.f32 %v2157_v34, %v1719_v35  ;;  %v2311_v37 = vpop.f32.mrb[33].mxu0 }
 0xf70   : > { %v1722_v38 = vpop.f32.mrb[34].mxu0 }
 0xf71   : > { %v1725_v39 = vmax.f32 %v1720_v36, 0.0  ;;  %v2312_v40 = vpop.f32.mrb[35].mxu0 }
 0xf73   : > { %v1726_v42 = vpack.c.bf16 %v1725_v39, %v1725_v39 }
 0xf75   : > { %2330 = vmatmul.mubr.bf16.vlgmr.msra.gmra.mrb[24].mxu1 %v1726_v42 }
0x1048   : > { %v1832_v44 = vpop.f32.mrb[24].mxu1 }
0x1049   : > { %v1833_v22 = vadd.f32 %v2161_v43, %v1832_v44  ;;  %v2331_v45 = vpop.f32.mrb[25].mxu1 }
0x104a   : > { %v1835_v46 = vpop.f32.mrb[26].mxu1 }
0x104b   : > { %v1838_v47 = vadd.f32 %v1833_v22, %v1657_v30  ;;  %v2332_v9 = vpop.f32.mrb[27].mxu1 }
0x104d   : > { %1839 = vst.msk [vmem:[%s778_s6] sm:$0xff] %vm785_vm0, %v1838_v47 }
0x104e   : > { %3057 = shalt.err (!%p3054_p0)
}
0x104f   : > { %s3058_s27 = scalar_lea.hbm %s3941_s20, 128  ;;  %s3062_s24 = scalar_lea.hbm %s4079_s3, 256 }
0x1050   : > { %p3059_p10 = scmp.ne.s32.totalorder %s3941_s20, %s3058_s27  ;;  %p3063_p7 = scmp.lt.u32.totalorder %s3941_s20, %s4079_s3 }
0x1051   : > { %p3064_p5 = scmp.lt.u32.totalorder %s3062_s24, %s3058_s27  ;;  %p3066_p8 = scmp.lt.u32.totalorder %s3058_s27, %s3941_s20 }
0x1052   : > { %p3060_p13 = pnand %p3059_p10, %p4080_p9 }
0x1053   : > { %p3065_p1 = por %p3064_p5, %p3063_p7 }
0x1054   : > { %p3061_p2 = pneg %p3060_p13 }
0x1055   : > { %p3067_p4 = por %p3066_p8, %p3065_p1 }
0x1057   : > { %p3068_p6 = pnand %p3067_p4, %p3061_p2 }
0x1059   : > { %3071 = shalt.err (!%p3068_p6)
}
0x105a   : > { %2393 = dma.vmem_to_hbm [thread:$0]  (%p4080_p9), %s3943_s7, 128, %s3941_s20, %s1841_s4  }
0x105b PF: > { %s4081_s29 = sld [smem:[#allocation40_spill]]  ;;  %p4082_p11 = scmp.ne.s32.totalorder %s4052_s28, 0 }
0x105c   : > { %p4083_p3 = scmp.ge.s32.totalorder %s3162_s26, 2 }
0x105e   : > { %p2446_p12 = pnand %p4083_p3, %p4082_p11 }
0x1061   : > { %s1867_s21 = sand.u32 1, %s4081_s29  }
0x1062   : > { %s1868_s18 = scalar_lea.sflag [#allocation4], %s1867_s21 }
0x1063   : > { %3137 = dma.done.wait (!%p2446_p12), %s1868_s18, 128  }
0x1064   : > { %3139 = vsyncadd (!%p2446_p12), %s1868_s18, 4294967168  ;;  %s42_s26 = sadd.s32 1, %s3162_s26   ;;  %s4084_s21 = sld [smem:[#allocation41_spill]] }
0x1065   : > { %p39_p0 = scmp.ge.s32.totalorder %s42_s26, 4   ;;  %s4085_s22 = smov %s3150_s23 }
0x1066   : > { %s4086_s23 = smov %s3667_s17  ;;  %s4087_s24 = smov %s3158_s25 }
0x1067   : > { %s4088_s25 = smov %s4090_s16  ;;  %41 = sbr.rel (!%p39_p0) target bundleno = 26 (0x1a), region = 201 }
0x106e   :  { %1873 = vsyncpa [#allocation3], 1 }
0x106f   :  { %1875 = vsyncpa [#allocation3 + $0x1], 1 }
0x1070   :  { %1876 = vsyncpa [#allocation6], 1 }
0x1071   :  { %1878 = vsyncpa [#allocation6 + $0x1], 1 }
0x1072   :  { %1879 = vsyncpa [#allocation9], 1 }
0x1073   :  { %1880 = vsyncpa [#allocation12], 1 }
0x1074   :  { %1881 = vsyncpa [#allocation15], 1 }
0x1075   :  { %1882 = vsyncpa [#allocation18], 1 }
0x1076   :  { %1883 = vsyncpa [#allocation21], 1 }
0x1077   :  { %1884 = vsyncpa [#allocation24], 1 }
0x1078   :  { %1885 = vsyncpa [#allocation27], 1 }
0x1079   :  { %1886 = vsyncpa [#allocation4], 1 }
0x107a   :  { %1888 = vsyncpa [#allocation4 + $0x1], 1 }

</bundles_post_ra>
